<compile_context>
chip_gen: v7x
topology: tpu7x:2x2x1
jax: 0.10.0
libtpu: 0.0.40
codegen_flags: <defaults>
</compile_context>

<pallas_src>
import functools
import math

import jax
import jax.numpy as jnp
from jax.experimental import pallas as pl
from jax.experimental.pallas import tpu as pltpu

# ---- model hyper-parameters (small, consistent with PET TransformerLayer) ----
D_MODEL = 32
N_HEADS = 4
HEAD_DIM = D_MODEL // N_HEADS
DIM_FF = 64
NUM_LAYERS = 2
SEQ = 8
BATCH = 2
TRANSFORMER_TYPE = "PreLN"   # "PreLN" -> final LayerNorm applied; "PostLN" -> not
LN_EPS = 1e-5
ATTN_EPS = 1e-15


# ----------------------------- Pallas kernel ----------------------------------
def _transformer_kernel(x_ref, *refs, use_mult, transformer_type,
                        num_layers, n_heads):
    if use_mult:
        mult_ref = refs[0]
        refs = refs[1:]
    else:
        mult_ref = None
    (wqkv_ref, bqkv_ref, wo_ref, bo_ref,
     ln1w_ref, ln1b_ref, ln2w_ref, ln2b_ref,
     w1_ref, b1_ref, w2_ref, b2_ref, fw_ref, fb_ref, o_ref) = refs

    x = x_ref[0]                      # (S, D)
    S, D = x.shape
    H = n_heads
    C = 3 * H                         # stacked Q/K/V head axis

    def layer_norm(v, w, b):
        mean = jnp.mean(v, axis=-1, keepdims=True)
        var = jnp.mean((v - mean) ** 2, axis=-1, keepdims=True)
        return (v - mean) * jax.lax.rsqrt(var + LN_EPS) * w + b

    def attention(v, l):
        # One batched projection for Q, K, V of all heads at once.
        vb = jnp.broadcast_to(v, (C, S, D))                              # (3H,S,D)
        qkv = jnp.einsum('csd,cde->cse', vb, wqkv_ref[l],
                         preferred_element_type=jnp.float32) + bqkv_ref[l]
        q = qkv[:H]                      # (H,S,Hd) -- 1/sqrt(Hd) already folded in
        k = qkv[H:2 * H]
        vv = qkv[2 * H:]
        scores = jnp.einsum('hqe,hke->hqk', q, k,
                            preferred_element_type=jnp.float32)          # (H,S,S)
        scores = scores - jnp.max(scores, axis=-1, keepdims=True)
        p = jnp.exp(scores)
        alpha = p / jnp.sum(p, axis=-1, keepdims=True)
        if use_mult:
            alpha = alpha * mult_ref[0][None, :, :]
            alpha = alpha / (jnp.sum(alpha, axis=-1, keepdims=True) + ATTN_EPS)
        o_h = jnp.einsum('hqk,hke->hqe', alpha, vv,
                         preferred_element_type=jnp.float32)             # (H,S,Hd)
        # Output projection: per-head matmul then sum over heads
        # (== concat(heads) @ W_out), all in registers.
        proj = jnp.einsum('hse,heo->hso', o_h, wo_ref[l],
                          preferred_element_type=jnp.float32)            # (H,S,D)
        return jnp.sum(proj, axis=0) + bo_ref[l]

    def mlp(v, l):
        h1 = jnp.dot(v, w1_ref[l], preferred_element_type=jnp.float32) + b1_ref[l]
        h1 = jax.nn.silu(h1)
        return jnp.dot(h1, w2_ref[l], preferred_element_type=jnp.float32) + b2_ref[l]

    for l in range(num_layers):
        if transformer_type == "PostLN":
            x = layer_norm(x + attention(x, l), ln1w_ref[l], ln1b_ref[l])
            x = layer_norm(x + mlp(x, l), ln2w_ref[l], ln2b_ref[l])
        else:  # PreLN
            x = x + attention(layer_norm(x, ln1w_ref[l], ln1b_ref[l]), l)
            x = x + mlp(layer_norm(x, ln2w_ref[l], ln2b_ref[l]), l)

    if transformer_type == "PreLN":
        x = layer_norm(x, fw_ref[...], fb_ref[...])

    o_ref[0] = x


# ------------------------------ JAX wrapper ------------------------------------
def transformer_forward(x, multipliers, stacked, final_params,
                        *, transformer_type=TRANSFORMER_TYPE):
    B, S, D = x.shape
    L = stacked["w_qkv"].shape[0]
    use_mult = multipliers is not None

    kernel = functools.partial(_transformer_kernel, use_mult=use_mult,
                               transformer_type=transformer_type,
                               num_layers=L, n_heads=N_HEADS)

    def replicated(arr):
        nd = arr.ndim
        return pl.BlockSpec(arr.shape, lambda b, _nd=nd: (0,) * _nd)

    weight_args = [stacked[k] for k in
                   ("w_qkv", "b_qkv", "w_out", "b_out",
                    "ln1_w", "ln1_b", "ln2_w", "ln2_b",
                    "w1", "b1", "w2", "b2")]
    weight_args += [final_params["w"], final_params["b"]]

    in_specs = [pl.BlockSpec((1, S, D), lambda b: (b, 0, 0))]
    args = [x]
    if use_mult:
        in_specs.append(pl.BlockSpec((1, S, S), lambda b: (b, 0, 0)))
        args.append(multipliers)
    in_specs += [replicated(a) for a in weight_args]
    args += weight_args

    return pl.pallas_call(
        kernel,
        out_shape=jax.ShapeDtypeStruct((B, S, D), x.dtype),
        grid_spec=pltpu.PrefetchScalarGridSpec(
            num_scalar_prefetch=0,
            grid=(B,),
            in_specs=in_specs,
            out_specs=pl.BlockSpec((1, S, D), lambda b: (b, 0, 0))),
        compiler_params=pltpu.CompilerParams(
            dimension_semantics=("parallel",)),   # shard batch across TCs on v7x
    )(*args)


# ------------------- parameter prep (head split + layer stacking) -------------
def prepare_params(layer_params, n_heads):
    def split_heads(p):
        D = p["w_qkv"].shape[0]
        Hd = D // n_heads
        scale = 1.0 / math.sqrt(Hd)
        # torch-style column layout of w_qkv: col = c*(H*Hd) + h*Hd + dh
        w = p["w_qkv"].reshape(D, 3, n_heads, Hd).transpose(1, 2, 0, 3)   # (3,H,D,Hd)
        b = p["b_qkv"].reshape(1, 3, n_heads, Hd).transpose(1, 2, 0, 3)   # (3,H,1,Hd)
        # fold the 1/sqrt(head_dim) attention-score scale into Q
        w = w.at[0].multiply(scale)
        b = b.at[0].multiply(scale)
        return dict(
            w_qkv=w.reshape(3 * n_heads, D, Hd),      # (3H, D, Hd)
            b_qkv=b.reshape(3 * n_heads, 1, Hd),      # (3H, 1, Hd)
            w_out=p["w_out"].reshape(n_heads, Hd, D), b_out=p["b_out"],
            ln1_w=p["ln1_w"], ln1_b=p["ln1_b"],
            ln2_w=p["ln2_w"], ln2_b=p["ln2_b"],
            w1=p["w1"], b1=p["b1"], w2=p["w2"], b2=p["b2"])

    per = [split_heads(p) for p in layer_params]
    return {k: jnp.stack([d[k] for d in per], axis=0) for k in per[0]}


# ---------------------- deterministic parameter init --------------------------
def init_params(key):
    def lin(k, fan_in, fan_out):
        bound = 1.0 / math.sqrt(fan_in)
        kw, kb = jax.random.split(k)
        w = jax.random.uniform(kw, (fan_in, fan_out), jnp.float32, -bound, bound)
        b = jax.random.uniform(kb, (1, fan_out), jnp.float32, -bound, bound)
        return w, b

    layers = []
    for lk in jax.random.split(key, NUM_LAYERS):
        ks = jax.random.split(lk, 4)
        w_qkv, b_qkv = lin(ks[0], D_MODEL, 3 * D_MODEL)
        w_out, b_out = lin(ks[1], D_MODEL, D_MODEL)
        w1, b1 = lin(ks[2], D_MODEL, DIM_FF)
        w2, b2 = lin(ks[3], DIM_FF, D_MODEL)
        layers.append(dict(
            w_qkv=w_qkv, b_qkv=b_qkv, w_out=w_out, b_out=b_out,
            ln1_w=jnp.ones((1, D_MODEL), jnp.float32),
            ln1_b=jnp.zeros((1, D_MODEL), jnp.float32),
            ln2_w=jnp.ones((1, D_MODEL), jnp.float32),
            ln2_b=jnp.zeros((1, D_MODEL), jnp.float32),
            w1=w1, b1=b1, w2=w2, b2=b2))
    final = dict(w=jnp.ones((1, D_MODEL), jnp.float32),
                 b=jnp.zeros((1, D_MODEL), jnp.float32))
    return layers, final


# --------------------------- pure-JAX reference --------------------------------
def _ref_layer(x, mult, p):
    def ln(v, w, b):
        mean = v.mean(-1, keepdims=True)
        var = ((v - mean) ** 2).mean(-1, keepdims=True)
        return (v - mean) / jnp.sqrt(var + LN_EPS) * w + b

    def attn(v):
        B, S, _ = v.shape
        qkv = v @ p["w_qkv"] + p["b_qkv"]
        qkv = qkv.reshape(B, S, 3, N_HEADS, HEAD_DIM).transpose(2, 0, 3, 1, 4)
        q, k, vv = qkv[0], qkv[1], qkv[2]
        a = jnp.einsum('bhqd,bhkd->bhqk', q, k) / math.sqrt(HEAD_DIM)
        a = jax.nn.softmax(a, axis=-1)
        if mult is not None:
            a = a * mult[:, None]
            a = a / (a.sum(-1, keepdims=True) + ATTN_EPS)
        o = jnp.einsum('bhqk,bhkd->bhqd', a, vv)
        o = o.transpose(0, 2, 1, 3).reshape(B, S, D_MODEL)
        return o @ p["w_out"] + p["b_out"]

    def mlp(v):
        return jax.nn.silu(v @ p["w1"] + p["b1"]) @ p["w2"] + p["b2"]

    if TRANSFORMER_TYPE == "PostLN":
        x = ln(x + attn(x), p["ln1_w"], p["ln1_b"])
        x = ln(x + mlp(x), p["ln2_w"], p["ln2_b"])
    else:
        x = x + attn(ln(x, p["ln1_w"], p["ln1_b"]))
        x = x + mlp(ln(x, p["ln2_w"], p["ln2_b"]))
    return x


def reference_forward(x, multipliers, layer_params, final_params):
    for p in layer_params:
        x = _ref_layer(x, multipliers, p)
    if TRANSFORMER_TYPE == "PreLN":
        mean = x.mean(-1, keepdims=True)
        var = ((x - mean) ** 2).mean(-1, keepdims=True)
        x = (x - mean) / jnp.sqrt(var + LN_EPS) * final_params["w"] + final_params["b"]
    return x


# ----------------------------------- main --------------------------------------
if __name__ == "__main__":
    key = jax.random.PRNGKey(0)
    kx, km, kp = jax.random.split(key, 3)
    x = jax.random.normal(kx, (BATCH, SEQ, D_MODEL), jnp.float32)
    multipliers = jax.random.uniform(km, (BATCH, SEQ, SEQ), jnp.float32, 0.1, 1.0)

    layer_params, final_params = init_params(kp)
    stacked = prepare_params(layer_params, N_HEADS)

    # With attention multipliers.
    out = transformer_forward(x, multipliers, stacked, final_params)
    out = jax.block_until_ready(out)
    ref = reference_forward(x, multipliers, layer_params, final_params)
    assert out.shape == (BATCH, SEQ, D_MODEL)
    assert float(jnp.max(jnp.abs(out - ref))) < 2e-3

    # multipliers=None path (no fake ones-tensor is allocated or DMA'd).
    out_nm = transformer_forward(x, None, stacked, final_params)
    out_nm = jax.block_until_ready(out_nm)
    ref_nm = reference_forward(x, None, layer_params, final_params)
    assert float(jnp.max(jnp.abs(out_nm - ref_nm))) < 2e-3

    print("KERNEL_OK")
</pallas_src>

<mosaic_0001>
module attributes {stable_mosaic.version = 11 : i64} {
  func.func @_transformer_kernel(%arg0: i32, %arg1: memref<1x8x32xf32, #tpu.memory_space<vmem>>, %arg2: memref<1x8x8xf32, #tpu.memory_space<vmem>>, %arg3: memref<2x12x32x8xf32, #tpu.memory_space<vmem>>, %arg4: memref<2x12x1x8xf32, #tpu.memory_space<vmem>>, %arg5: memref<2x4x8x32xf32, #tpu.memory_space<vmem>>, %arg6: memref<2x1x32xf32, #tpu.memory_space<vmem>>, %arg7: memref<2x1x32xf32, #tpu.memory_space<vmem>>, %arg8: memref<2x1x32xf32, #tpu.memory_space<vmem>>, %arg9: memref<2x1x32xf32, #tpu.memory_space<vmem>>, %arg10: memref<2x1x32xf32, #tpu.memory_space<vmem>>, %arg11: memref<2x32x64xf32, #tpu.memory_space<vmem>>, %arg12: memref<2x1x64xf32, #tpu.memory_space<vmem>>, %arg13: memref<2x64x32xf32, #tpu.memory_space<vmem>>, %arg14: memref<2x1x32xf32, #tpu.memory_space<vmem>>, %arg15: memref<1x32xf32, #tpu.memory_space<vmem>>, %arg16: memref<1x32xf32, #tpu.memory_space<vmem>>, %arg17: memref<1x8x32xf32, #tpu.memory_space<vmem>>) attributes {dimension_semantics = [#tpu.dimension_semantics<parallel>], iteration_bounds = array<i64: 2>, scalar_prefetch = 0 : i64, scratch_operands = 0 : i64, tpu.core_type = #tpu.core_type<tc>, window_params = [{transform_indices = @transform_0, window_bounds = array<i64: 1, 8, 32>}, {transform_indices = @transform_1, window_bounds = array<i64: 1, 8, 8>}, {pipeline_mode = #tpu.pipeline_mode<synchronous>, transform_indices = @transform_2, window_bounds = array<i64: 2, 12, 32, 8>}, {pipeline_mode = #tpu.pipeline_mode<synchronous>, transform_indices = @transform_3, window_bounds = array<i64: 2, 12, 1, 8>}, {pipeline_mode = #tpu.pipeline_mode<synchronous>, transform_indices = @transform_4, window_bounds = array<i64: 2, 4, 8, 32>}, {pipeline_mode = #tpu.pipeline_mode<synchronous>, transform_indices = @transform_5, window_bounds = array<i64: 2, 1, 32>}, {pipeline_mode = #tpu.pipeline_mode<synchronous>, transform_indices = @transform_6, window_bounds = array<i64: 2, 1, 32>}, {pipeline_mode = #tpu.pipeline_mode<synchronous>, transform_indices = @transform_7, window_bounds = array<i64: 2, 1, 32>}, {pipeline_mode = #tpu.pipeline_mode<synchronous>, transform_indices = @transform_8, window_bounds = array<i64: 2, 1, 32>}, {pipeline_mode = #tpu.pipeline_mode<synchronous>, transform_indices = @transform_9, window_bounds = array<i64: 2, 1, 32>}, {pipeline_mode = #tpu.pipeline_mode<synchronous>, transform_indices = @transform_10, window_bounds = array<i64: 2, 32, 64>}, {pipeline_mode = #tpu.pipeline_mode<synchronous>, transform_indices = @transform_11, window_bounds = array<i64: 2, 1, 64>}, {pipeline_mode = #tpu.pipeline_mode<synchronous>, transform_indices = @transform_12, window_bounds = array<i64: 2, 64, 32>}, {pipeline_mode = #tpu.pipeline_mode<synchronous>, transform_indices = @transform_13, window_bounds = array<i64: 2, 1, 32>}, {pipeline_mode = #tpu.pipeline_mode<synchronous>, transform_indices = @transform_14, window_bounds = array<i64: 1, 32>}, {pipeline_mode = #tpu.pipeline_mode<synchronous>, transform_indices = @transform_15, window_bounds = array<i64: 1, 32>}, {transform_indices = @transform_16, window_bounds = array<i64: 1, 8, 32>}]} {
    %c0 = arith.constant 0 : index
    %c0_0 = arith.constant 0 : index
    %c0_1 = arith.constant 0 : index
    %0 = vector.load %arg1[%c0, %c0_0, %c0_1] : memref<1x8x32xf32, #tpu.memory_space<vmem>>, vector<1x8x32xf32>
    %1 = vector.shape_cast %0 : vector<1x8x32xf32> to vector<8x32xf32>
    %c0_2 = arith.constant 0 : index
    %c0_3 = arith.constant 0 : index
    %c0_4 = arith.constant 0 : index
    %2 = vector.load %arg7[%c0_2, %c0_3, %c0_4] : memref<2x1x32xf32, #tpu.memory_space<vmem>>, vector<1x1x32xf32>
    %3 = vector.shape_cast %2 : vector<1x1x32xf32> to vector<1x32xf32>
    %c0_5 = arith.constant 0 : index
    %c0_6 = arith.constant 0 : index
    %c0_7 = arith.constant 0 : index
    %4 = vector.load %arg8[%c0_5, %c0_6, %c0_7] : memref<2x1x32xf32, #tpu.memory_space<vmem>>, vector<1x1x32xf32>
    %5 = vector.shape_cast %4 : vector<1x1x32xf32> to vector<1x32xf32>
    %cst = arith.constant dense<0.000000e+00> : vector<8xf32>
    %6 = vector.multi_reduction <add>, %1, %cst [1] : vector<8x32xf32> to vector<8xf32>
    %7 = vector.shape_cast %6 : vector<8xf32> to vector<8x1xf32>
    %cst_8 = arith.constant 3.200000e+01 : f32
    %8 = vector.broadcast %cst_8 : f32 to vector<8x1xf32>
    %9 = arith.divf %7, %8 : vector<8x1xf32>
    %10 = vector.broadcast %9 : vector<8x1xf32> to vector<8x32xf32>
    %11 = arith.subf %1, %10 : vector<8x32xf32>
    %12 = arith.mulf %11, %11 : vector<8x32xf32>
    %cst_9 = arith.constant dense<0.000000e+00> : vector<8xf32>
    %13 = vector.multi_reduction <add>, %12, %cst_9 [1] : vector<8x32xf32> to vector<8xf32>
    %14 = vector.shape_cast %13 : vector<8xf32> to vector<8x1xf32>
    %cst_10 = arith.constant 3.200000e+01 : f32
    %15 = vector.broadcast %cst_10 : f32 to vector<8x1xf32>
    %16 = arith.divf %14, %15 : vector<8x1xf32>
    %17 = vector.broadcast %9 : vector<8x1xf32> to vector<8x32xf32>
    %18 = arith.subf %1, %17 : vector<8x32xf32>
    %cst_11 = arith.constant 9.99999974E-6 : f32
    %19 = vector.broadcast %cst_11 : f32 to vector<8x1xf32>
    %20 = arith.addf %16, %19 : vector<8x1xf32>
    %21 = math.rsqrt %20 : vector<8x1xf32>
    %22 = vector.broadcast %21 : vector<8x1xf32> to vector<8x32xf32>
    %23 = arith.mulf %18, %22 : vector<8x32xf32>
    %24 = vector.broadcast %3 : vector<1x32xf32> to vector<8x32xf32>
    %25 = arith.mulf %23, %24 : vector<8x32xf32>
    %26 = vector.broadcast %5 : vector<1x32xf32> to vector<8x32xf32>
    %27 = arith.addf %25, %26 : vector<8x32xf32>
    %28 = vector.shape_cast %27 : vector<8x32xf32> to vector<1x8x32xf32>
    %29 = vector.broadcast %28 : vector<1x8x32xf32> to vector<12x8x32xf32>
    %c0_12 = arith.constant 0 : index
    %c0_13 = arith.constant 0 : index
    %c0_14 = arith.constant 0 : index
    %c0_15 = arith.constant 0 : index
    %30 = vector.load %arg3[%c0_12, %c0_13, %c0_14, %c0_15] : memref<2x12x32x8xf32, #tpu.memory_space<vmem>>, vector<1x12x32x8xf32>
    %31 = vector.shape_cast %30 : vector<1x12x32x8xf32> to vector<12x32x8xf32>
    "tpu.trace_start"() <{level = 10 : i32, message = "csd,cde->cse"}> : () -> ()
    %cst_16 = arith.constant dense<0.000000e+00> : vector<12x8x8xf32>
    %32 = tpu.matmul %29, %31, %cst_16 {dimension_numbers = #tpu.dot_dimension_numbers<[2], [1], [1], [2], [0, 0, 0, 1, 1, 2], [0], [0]>} : vector<12x8x32xf32>, vector<12x32x8xf32>, vector<12x8x8xf32> -> vector<12x8x8xf32>
    "tpu.trace_stop"() : () -> ()
    %c0_17 = arith.constant 0 : index
    %c0_18 = arith.constant 0 : index
    %c0_19 = arith.constant 0 : index
    %c0_20 = arith.constant 0 : index
    %33 = vector.load %arg4[%c0_17, %c0_18, %c0_19, %c0_20] : memref<2x12x1x8xf32, #tpu.memory_space<vmem>>, vector<1x12x1x8xf32>
    %34 = vector.shape_cast %33 : vector<1x12x1x8xf32> to vector<12x1x8xf32>
    %35 = vector.broadcast %34 : vector<12x1x8xf32> to vector<12x8x8xf32>
    %36 = arith.addf %32, %35 : vector<12x8x8xf32>
    %37 = vector.extract_strided_slice %36 {offsets = [0, 0, 0], sizes = [4, 8, 8], strides = [1, 1, 1]} : vector<12x8x8xf32> to vector<4x8x8xf32>
    %38 = vector.extract_strided_slice %36 {offsets = [4, 0, 0], sizes = [4, 8, 8], strides = [1, 1, 1]} : vector<12x8x8xf32> to vector<4x8x8xf32>
    %39 = vector.extract_strided_slice %36 {offsets = [8, 0, 0], sizes = [4, 8, 8], strides = [1, 1, 1]} : vector<12x8x8xf32> to vector<4x8x8xf32>
    "tpu.trace_start"() <{level = 10 : i32, message = "hqe,hke->hqk"}> : () -> ()
    %cst_21 = arith.constant dense<0.000000e+00> : vector<4x8x8xf32>
    %40 = tpu.matmul %37, %38, %cst_21 {dimension_numbers = #tpu.dot_dimension_numbers<[2], [2], [1], [1], [0, 0, 0, 1, 1, 1], [0], [0]>} : vector<4x8x8xf32>, vector<4x8x8xf32>, vector<4x8x8xf32> -> vector<4x8x8xf32>
    "tpu.trace_stop"() : () -> ()
    %cst_22 = arith.constant dense<0xFF800000> : vector<4x8xf32>
    %41 = vector.multi_reduction <maximumf>, %40, %cst_22 [2] : vector<4x8x8xf32> to vector<4x8xf32>
    %42 = vector.shape_cast %41 : vector<4x8xf32> to vector<4x8x1xf32>
    %43 = vector.broadcast %42 : vector<4x8x1xf32> to vector<4x8x8xf32>
    %44 = arith.subf %40, %43 : vector<4x8x8xf32>
    %45 = math.exp %44 : vector<4x8x8xf32>
    %cst_23 = arith.constant dense<0.000000e+00> : vector<4x8xf32>
    %46 = vector.multi_reduction <add>, %45, %cst_23 [2] : vector<4x8x8xf32> to vector<4x8xf32>
    %47 = vector.shape_cast %46 : vector<4x8xf32> to vector<4x8x1xf32>
    %48 = vector.broadcast %47 : vector<4x8x1xf32> to vector<4x8x8xf32>
    %49 = arith.divf %45, %48 : vector<4x8x8xf32>
    %c0_24 = arith.constant 0 : index
    %c0_25 = arith.constant 0 : index
    %c0_26 = arith.constant 0 : index
    %50 = vector.load %arg2[%c0_24, %c0_25, %c0_26] : memref<1x8x8xf32, #tpu.memory_space<vmem>>, vector<1x8x8xf32>
    %51 = vector.shape_cast %50 : vector<1x8x8xf32> to vector<8x8xf32>
    %52 = vector.shape_cast %51 : vector<8x8xf32> to vector<1x8x8xf32>
    %53 = vector.broadcast %52 : vector<1x8x8xf32> to vector<4x8x8xf32>
    %54 = arith.mulf %49, %53 : vector<4x8x8xf32>
    %cst_27 = arith.constant dense<0.000000e+00> : vector<4x8xf32>
    %55 = vector.multi_reduction <add>, %54, %cst_27 [2] : vector<4x8x8xf32> to vector<4x8xf32>
    %56 = vector.shape_cast %55 : vector<4x8xf32> to vector<4x8x1xf32>
    %cst_28 = arith.constant 1.000000e-15 : f32
    %57 = vector.broadcast %cst_28 : f32 to vector<4x8x1xf32>
    %58 = arith.addf %56, %57 : vector<4x8x1xf32>
    %59 = vector.broadcast %58 : vector<4x8x1xf32> to vector<4x8x8xf32>
    %60 = arith.divf %54, %59 : vector<4x8x8xf32>
    "tpu.trace_start"() <{level = 10 : i32, message = "hqk,hke->hqe"}> : () -> ()
    %cst_29 = arith.constant dense<0.000000e+00> : vector<4x8x8xf32>
    %61 = tpu.matmul %60, %39, %cst_29 {dimension_numbers = #tpu.dot_dimension_numbers<[2], [1], [1], [2], [0, 0, 0, 1, 1, 2], [0], [0]>} : vector<4x8x8xf32>, vector<4x8x8xf32>, vector<4x8x8xf32> -> vector<4x8x8xf32>
    "tpu.trace_stop"() : () -> ()
    %c0_30 = arith.constant 0 : index
    %c0_31 = arith.constant 0 : index
    %c0_32 = arith.constant 0 : index
    %c0_33 = arith.constant 0 : index
    %62 = vector.load %arg5[%c0_30, %c0_31, %c0_32, %c0_33] : memref<2x4x8x32xf32, #tpu.memory_space<vmem>>, vector<1x4x8x32xf32>
    %63 = vector.shape_cast %62 : vector<1x4x8x32xf32> to vector<4x8x32xf32>
    "tpu.trace_start"() <{level = 10 : i32, message = "hse,heo->hso"}> : () -> ()
    %cst_34 = arith.constant dense<0.000000e+00> : vector<4x8x32xf32>
    %64 = tpu.matmul %61, %63, %cst_34 {dimension_numbers = #tpu.dot_dimension_numbers<[2], [1], [1], [2], [0, 0, 0, 1, 1, 2], [0], [0]>} : vector<4x8x8xf32>, vector<4x8x32xf32>, vector<4x8x32xf32> -> vector<4x8x32xf32>
    "tpu.trace_stop"() : () -> ()
    %cst_35 = arith.constant dense<0.000000e+00> : vector<8x32xf32>
    %65 = vector.multi_reduction <add>, %64, %cst_35 [0] : vector<4x8x32xf32> to vector<8x32xf32>
    %c0_36 = arith.constant 0 : index
    %c0_37 = arith.constant 0 : index
    %c0_38 = arith.constant 0 : index
    %66 = vector.load %arg6[%c0_36, %c0_37, %c0_38] : memref<2x1x32xf32, #tpu.memory_space<vmem>>, vector<1x1x32xf32>
    %67 = vector.shape_cast %66 : vector<1x1x32xf32> to vector<1x32xf32>
    %68 = vector.broadcast %67 : vector<1x32xf32> to vector<8x32xf32>
    %69 = arith.addf %65, %68 : vector<8x32xf32>
    %70 = arith.addf %1, %69 : vector<8x32xf32>
    %c0_39 = arith.constant 0 : index
    %c0_40 = arith.constant 0 : index
    %c0_41 = arith.constant 0 : index
    %71 = vector.load %arg9[%c0_39, %c0_40, %c0_41] : memref<2x1x32xf32, #tpu.memory_space<vmem>>, vector<1x1x32xf32>
    %72 = vector.shape_cast %71 : vector<1x1x32xf32> to vector<1x32xf32>
    %c0_42 = arith.constant 0 : index
    %c0_43 = arith.constant 0 : index
    %c0_44 = arith.constant 0 : index
    %73 = vector.load %arg10[%c0_42, %c0_43, %c0_44] : memref<2x1x32xf32, #tpu.memory_space<vmem>>, vector<1x1x32xf32>
    %74 = vector.shape_cast %73 : vector<1x1x32xf32> to vector<1x32xf32>
    %cst_45 = arith.constant dense<0.000000e+00> : vector<8xf32>
    %75 = vector.multi_reduction <add>, %70, %cst_45 [1] : vector<8x32xf32> to vector<8xf32>
    %76 = vector.shape_cast %75 : vector<8xf32> to vector<8x1xf32>
    %cst_46 = arith.constant 3.200000e+01 : f32
    %77 = vector.broadcast %cst_46 : f32 to vector<8x1xf32>
    %78 = arith.divf %76, %77 : vector<8x1xf32>
    %79 = vector.broadcast %78 : vector<8x1xf32> to vector<8x32xf32>
    %80 = arith.subf %70, %79 : vector<8x32xf32>
    %81 = arith.mulf %80, %80 : vector<8x32xf32>
    %cst_47 = arith.constant dense<0.000000e+00> : vector<8xf32>
    %82 = vector.multi_reduction <add>, %81, %cst_47 [1] : vector<8x32xf32> to vector<8xf32>
    %83 = vector.shape_cast %82 : vector<8xf32> to vector<8x1xf32>
    %cst_48 = arith.constant 3.200000e+01 : f32
    %84 = vector.broadcast %cst_48 : f32 to vector<8x1xf32>
    %85 = arith.divf %83, %84 : vector<8x1xf32>
    %86 = vector.broadcast %78 : vector<8x1xf32> to vector<8x32xf32>
    %87 = arith.subf %70, %86 : vector<8x32xf32>
    %cst_49 = arith.constant 9.99999974E-6 : f32
    %88 = vector.broadcast %cst_49 : f32 to vector<8x1xf32>
    %89 = arith.addf %85, %88 : vector<8x1xf32>
    %90 = math.rsqrt %89 : vector<8x1xf32>
    %91 = vector.broadcast %90 : vector<8x1xf32> to vector<8x32xf32>
    %92 = arith.mulf %87, %91 : vector<8x32xf32>
    %93 = vector.broadcast %72 : vector<1x32xf32> to vector<8x32xf32>
    %94 = arith.mulf %92, %93 : vector<8x32xf32>
    %95 = vector.broadcast %74 : vector<1x32xf32> to vector<8x32xf32>
    %96 = arith.addf %94, %95 : vector<8x32xf32>
    %c0_50 = arith.constant 0 : index
    %c0_51 = arith.constant 0 : index
    %c0_52 = arith.constant 0 : index
    %97 = vector.load %arg11[%c0_50, %c0_51, %c0_52] : memref<2x32x64xf32, #tpu.memory_space<vmem>>, vector<1x32x64xf32>
    %98 = vector.shape_cast %97 : vector<1x32x64xf32> to vector<32x64xf32>
    %cst_53 = arith.constant dense<0.000000e+00> : vector<8x64xf32>
    %99 = tpu.matmul %96, %98, %cst_53 {dimension_numbers = #tpu.dot_dimension_numbers<[1], [0], [0], [1], [0, 0, 1, 1], [], []>} : vector<8x32xf32>, vector<32x64xf32>, vector<8x64xf32> -> vector<8x64xf32>
    %c0_54 = arith.constant 0 : index
    %c0_55 = arith.constant 0 : index
    %c0_56 = arith.constant 0 : index
    %100 = vector.load %arg12[%c0_54, %c0_55, %c0_56] : memref<2x1x64xf32, #tpu.memory_space<vmem>>, vector<1x1x64xf32>
    %101 = vector.shape_cast %100 : vector<1x1x64xf32> to vector<1x64xf32>
    %102 = vector.broadcast %101 : vector<1x64xf32> to vector<8x64xf32>
    %103 = arith.addf %99, %102 : vector<8x64xf32>
    %104 = arith.negf %103 : vector<8x64xf32>
    %105 = math.exp %104 : vector<8x64xf32>
    %cst_57 = arith.constant 1.000000e+00 : f32
    %106 = vector.broadcast %cst_57 : f32 to vector<8x64xf32>
    %107 = arith.addf %106, %105 : vector<8x64xf32>
    %108 = arith.divf %106, %107 : vector<8x64xf32>
    %109 = arith.mulf %103, %108 : vector<8x64xf32>
    %c0_58 = arith.constant 0 : index
    %c0_59 = arith.constant 0 : index
    %c0_60 = arith.constant 0 : index
    %110 = vector.load %arg13[%c0_58, %c0_59, %c0_60] : memref<2x64x32xf32, #tpu.memory_space<vmem>>, vector<1x64x32xf32>
    %111 = vector.shape_cast %110 : vector<1x64x32xf32> to vector<64x32xf32>
    %cst_61 = arith.constant dense<0.000000e+00> : vector<8x32xf32>
    %112 = tpu.matmul %109, %111, %cst_61 {dimension_numbers = #tpu.dot_dimension_numbers<[1], [0], [0], [1], [0, 0, 1, 1], [], []>} : vector<8x64xf32>, vector<64x32xf32>, vector<8x32xf32> -> vector<8x32xf32>
    %c0_62 = arith.constant 0 : index
    %c0_63 = arith.constant 0 : index
    %c0_64 = arith.constant 0 : index
    %113 = vector.load %arg14[%c0_62, %c0_63, %c0_64] : memref<2x1x32xf32, #tpu.memory_space<vmem>>, vector<1x1x32xf32>
    %114 = vector.shape_cast %113 : vector<1x1x32xf32> to vector<1x32xf32>
    %115 = vector.broadcast %114 : vector<1x32xf32> to vector<8x32xf32>
    %116 = arith.addf %112, %115 : vector<8x32xf32>
    %117 = arith.addf %70, %116 : vector<8x32xf32>
    %c1 = arith.constant 1 : index
    %c0_65 = arith.constant 0 : index
    %c0_66 = arith.constant 0 : index
    %118 = vector.load %arg7[%c1, %c0_65, %c0_66] : memref<2x1x32xf32, #tpu.memory_space<vmem>>, vector<1x1x32xf32>
    %119 = vector.shape_cast %118 : vector<1x1x32xf32> to vector<1x32xf32>
    %c1_67 = arith.constant 1 : index
    %c0_68 = arith.constant 0 : index
    %c0_69 = arith.constant 0 : index
    %120 = vector.load %arg8[%c1_67, %c0_68, %c0_69] : memref<2x1x32xf32, #tpu.memory_space<vmem>>, vector<1x1x32xf32>
    %121 = vector.shape_cast %120 : vector<1x1x32xf32> to vector<1x32xf32>
    %cst_70 = arith.constant dense<0.000000e+00> : vector<8xf32>
    %122 = vector.multi_reduction <add>, %117, %cst_70 [1] : vector<8x32xf32> to vector<8xf32>
    %123 = vector.shape_cast %122 : vector<8xf32> to vector<8x1xf32>
    %cst_71 = arith.constant 3.200000e+01 : f32
    %124 = vector.broadcast %cst_71 : f32 to vector<8x1xf32>
    %125 = arith.divf %123, %124 : vector<8x1xf32>
    %126 = vector.broadcast %125 : vector<8x1xf32> to vector<8x32xf32>
    %127 = arith.subf %117, %126 : vector<8x32xf32>
    %128 = arith.mulf %127, %127 : vector<8x32xf32>
    %cst_72 = arith.constant dense<0.000000e+00> : vector<8xf32>
    %129 = vector.multi_reduction <add>, %128, %cst_72 [1] : vector<8x32xf32> to vector<8xf32>
    %130 = vector.shape_cast %129 : vector<8xf32> to vector<8x1xf32>
    %cst_73 = arith.constant 3.200000e+01 : f32
    %131 = vector.broadcast %cst_73 : f32 to vector<8x1xf32>
    %132 = arith.divf %130, %131 : vector<8x1xf32>
    %133 = vector.broadcast %125 : vector<8x1xf32> to vector<8x32xf32>
    %134 = arith.subf %117, %133 : vector<8x32xf32>
    %cst_74 = arith.constant 9.99999974E-6 : f32
    %135 = vector.broadcast %cst_74 : f32 to vector<8x1xf32>
    %136 = arith.addf %132, %135 : vector<8x1xf32>
    %137 = math.rsqrt %136 : vector<8x1xf32>
    %138 = vector.broadcast %137 : vector<8x1xf32> to vector<8x32xf32>
    %139 = arith.mulf %134, %138 : vector<8x32xf32>
    %140 = vector.broadcast %119 : vector<1x32xf32> to vector<8x32xf32>
    %141 = arith.mulf %139, %140 : vector<8x32xf32>
    %142 = vector.broadcast %121 : vector<1x32xf32> to vector<8x32xf32>
    %143 = arith.addf %141, %142 : vector<8x32xf32>
    %144 = vector.shape_cast %143 : vector<8x32xf32> to vector<1x8x32xf32>
    %145 = vector.broadcast %144 : vector<1x8x32xf32> to vector<12x8x32xf32>
    %c1_75 = arith.constant 1 : index
    %c0_76 = arith.constant 0 : index
    %c0_77 = arith.constant 0 : index
    %c0_78 = arith.constant 0 : index
    %146 = vector.load %arg3[%c1_75, %c0_76, %c0_77, %c0_78] : memref<2x12x32x8xf32, #tpu.memory_space<vmem>>, vector<1x12x32x8xf32>
    %147 = vector.shape_cast %146 : vector<1x12x32x8xf32> to vector<12x32x8xf32>
    "tpu.trace_start"() <{level = 10 : i32, message = "csd,cde->cse"}> : () -> ()
    %cst_79 = arith.constant dense<0.000000e+00> : vector<12x8x8xf32>
    %148 = tpu.matmul %145, %147, %cst_79 {dimension_numbers = #tpu.dot_dimension_numbers<[2], [1], [1], [2], [0, 0, 0, 1, 1, 2], [0], [0]>} : vector<12x8x32xf32>, vector<12x32x8xf32>, vector<12x8x8xf32> -> vector<12x8x8xf32>
    "tpu.trace_stop"() : () -> ()
    %c1_80 = arith.constant 1 : index
    %c0_81 = arith.constant 0 : index
    %c0_82 = arith.constant 0 : index
    %c0_83 = arith.constant 0 : index
    %149 = vector.load %arg4[%c1_80, %c0_81, %c0_82, %c0_83] : memref<2x12x1x8xf32, #tpu.memory_space<vmem>>, vector<1x12x1x8xf32>
    %150 = vector.shape_cast %149 : vector<1x12x1x8xf32> to vector<12x1x8xf32>
    %151 = vector.broadcast %150 : vector<12x1x8xf32> to vector<12x8x8xf32>
    %152 = arith.addf %148, %151 : vector<12x8x8xf32>
    %153 = vector.extract_strided_slice %152 {offsets = [0, 0, 0], sizes = [4, 8, 8], strides = [1, 1, 1]} : vector<12x8x8xf32> to vector<4x8x8xf32>
    %154 = vector.extract_strided_slice %152 {offsets = [4, 0, 0], sizes = [4, 8, 8], strides = [1, 1, 1]} : vector<12x8x8xf32> to vector<4x8x8xf32>
    %155 = vector.extract_strided_slice %152 {offsets = [8, 0, 0], sizes = [4, 8, 8], strides = [1, 1, 1]} : vector<12x8x8xf32> to vector<4x8x8xf32>
    "tpu.trace_start"() <{level = 10 : i32, message = "hqe,hke->hqk"}> : () -> ()
    %cst_84 = arith.constant dense<0.000000e+00> : vector<4x8x8xf32>
    %156 = tpu.matmul %153, %154, %cst_84 {dimension_numbers = #tpu.dot_dimension_numbers<[2], [2], [1], [1], [0, 0, 0, 1, 1, 1], [0], [0]>} : vector<4x8x8xf32>, vector<4x8x8xf32>, vector<4x8x8xf32> -> vector<4x8x8xf32>
    "tpu.trace_stop"() : () -> ()
    %cst_85 = arith.constant dense<0xFF800000> : vector<4x8xf32>
    %157 = vector.multi_reduction <maximumf>, %156, %cst_85 [2] : vector<4x8x8xf32> to vector<4x8xf32>
    %158 = vector.shape_cast %157 : vector<4x8xf32> to vector<4x8x1xf32>
    %159 = vector.broadcast %158 : vector<4x8x1xf32> to vector<4x8x8xf32>
    %160 = arith.subf %156, %159 : vector<4x8x8xf32>
    %161 = math.exp %160 : vector<4x8x8xf32>
    %cst_86 = arith.constant dense<0.000000e+00> : vector<4x8xf32>
    %162 = vector.multi_reduction <add>, %161, %cst_86 [2] : vector<4x8x8xf32> to vector<4x8xf32>
    %163 = vector.shape_cast %162 : vector<4x8xf32> to vector<4x8x1xf32>
    %164 = vector.broadcast %163 : vector<4x8x1xf32> to vector<4x8x8xf32>
    %165 = arith.divf %161, %164 : vector<4x8x8xf32>
    %c0_87 = arith.constant 0 : index
    %c0_88 = arith.constant 0 : index
    %c0_89 = arith.constant 0 : index
    %166 = vector.load %arg2[%c0_87, %c0_88, %c0_89] : memref<1x8x8xf32, #tpu.memory_space<vmem>>, vector<1x8x8xf32>
    %167 = vector.shape_cast %166 : vector<1x8x8xf32> to vector<8x8xf32>
    %168 = vector.shape_cast %167 : vector<8x8xf32> to vector<1x8x8xf32>
    %169 = vector.broadcast %168 : vector<1x8x8xf32> to vector<4x8x8xf32>
    %170 = arith.mulf %165, %169 : vector<4x8x8xf32>
    %cst_90 = arith.constant dense<0.000000e+00> : vector<4x8xf32>
    %171 = vector.multi_reduction <add>, %170, %cst_90 [2] : vector<4x8x8xf32> to vector<4x8xf32>
    %172 = vector.shape_cast %171 : vector<4x8xf32> to vector<4x8x1xf32>
    %cst_91 = arith.constant 1.000000e-15 : f32
    %173 = vector.broadcast %cst_91 : f32 to vector<4x8x1xf32>
    %174 = arith.addf %172, %173 : vector<4x8x1xf32>
    %175 = vector.broadcast %174 : vector<4x8x1xf32> to vector<4x8x8xf32>
    %176 = arith.divf %170, %175 : vector<4x8x8xf32>
    "tpu.trace_start"() <{level = 10 : i32, message = "hqk,hke->hqe"}> : () -> ()
    %cst_92 = arith.constant dense<0.000000e+00> : vector<4x8x8xf32>
    %177 = tpu.matmul %176, %155, %cst_92 {dimension_numbers = #tpu.dot_dimension_numbers<[2], [1], [1], [2], [0, 0, 0, 1, 1, 2], [0], [0]>} : vector<4x8x8xf32>, vector<4x8x8xf32>, vector<4x8x8xf32> -> vector<4x8x8xf32>
    "tpu.trace_stop"() : () -> ()
    %c1_93 = arith.constant 1 : index
    %c0_94 = arith.constant 0 : index
    %c0_95 = arith.constant 0 : index
    %c0_96 = arith.constant 0 : index
    %178 = vector.load %arg5[%c1_93, %c0_94, %c0_95, %c0_96] : memref<2x4x8x32xf32, #tpu.memory_space<vmem>>, vector<1x4x8x32xf32>
    %179 = vector.shape_cast %178 : vector<1x4x8x32xf32> to vector<4x8x32xf32>
    "tpu.trace_start"() <{level = 10 : i32, message = "hse,heo->hso"}> : () -> ()
    %cst_97 = arith.constant dense<0.000000e+00> : vector<4x8x32xf32>
    %180 = tpu.matmul %177, %179, %cst_97 {dimension_numbers = #tpu.dot_dimension_numbers<[2], [1], [1], [2], [0, 0, 0, 1, 1, 2], [0], [0]>} : vector<4x8x8xf32>, vector<4x8x32xf32>, vector<4x8x32xf32> -> vector<4x8x32xf32>
    "tpu.trace_stop"() : () -> ()
    %cst_98 = arith.constant dense<0.000000e+00> : vector<8x32xf32>
    %181 = vector.multi_reduction <add>, %180, %cst_98 [0] : vector<4x8x32xf32> to vector<8x32xf32>
    %c1_99 = arith.constant 1 : index
    %c0_100 = arith.constant 0 : index
    %c0_101 = arith.constant 0 : index
    %182 = vector.load %arg6[%c1_99, %c0_100, %c0_101] : memref<2x1x32xf32, #tpu.memory_space<vmem>>, vector<1x1x32xf32>
    %183 = vector.shape_cast %182 : vector<1x1x32xf32> to vector<1x32xf32>
    %184 = vector.broadcast %183 : vector<1x32xf32> to vector<8x32xf32>
    %185 = arith.addf %181, %184 : vector<8x32xf32>
    %186 = arith.addf %117, %185 : vector<8x32xf32>
    %c1_102 = arith.constant 1 : index
    %c0_103 = arith.constant 0 : index
    %c0_104 = arith.constant 0 : index
    %187 = vector.load %arg9[%c1_102, %c0_103, %c0_104] : memref<2x1x32xf32, #tpu.memory_space<vmem>>, vector<1x1x32xf32>
    %188 = vector.shape_cast %187 : vector<1x1x32xf32> to vector<1x32xf32>
    %c1_105 = arith.constant 1 : index
    %c0_106 = arith.constant 0 : index
    %c0_107 = arith.constant 0 : index
    %189 = vector.load %arg10[%c1_105, %c0_106, %c0_107] : memref<2x1x32xf32, #tpu.memory_space<vmem>>, vector<1x1x32xf32>
    %190 = vector.shape_cast %189 : vector<1x1x32xf32> to vector<1x32xf32>
    %cst_108 = arith.constant dense<0.000000e+00> : vector<8xf32>
    %191 = vector.multi_reduction <add>, %186, %cst_108 [1] : vector<8x32xf32> to vector<8xf32>
    %192 = vector.shape_cast %191 : vector<8xf32> to vector<8x1xf32>
    %cst_109 = arith.constant 3.200000e+01 : f32
    %193 = vector.broadcast %cst_109 : f32 to vector<8x1xf32>
    %194 = arith.divf %192, %193 : vector<8x1xf32>
    %195 = vector.broadcast %194 : vector<8x1xf32> to vector<8x32xf32>
    %196 = arith.subf %186, %195 : vector<8x32xf32>
    %197 = arith.mulf %196, %196 : vector<8x32xf32>
    %cst_110 = arith.constant dense<0.000000e+00> : vector<8xf32>
    %198 = vector.multi_reduction <add>, %197, %cst_110 [1] : vector<8x32xf32> to vector<8xf32>
    %199 = vector.shape_cast %198 : vector<8xf32> to vector<8x1xf32>
    %cst_111 = arith.constant 3.200000e+01 : f32
    %200 = vector.broadcast %cst_111 : f32 to vector<8x1xf32>
    %201 = arith.divf %199, %200 : vector<8x1xf32>
    %202 = vector.broadcast %194 : vector<8x1xf32> to vector<8x32xf32>
    %203 = arith.subf %186, %202 : vector<8x32xf32>
    %cst_112 = arith.constant 9.99999974E-6 : f32
    %204 = vector.broadcast %cst_112 : f32 to vector<8x1xf32>
    %205 = arith.addf %201, %204 : vector<8x1xf32>
    %206 = math.rsqrt %205 : vector<8x1xf32>
    %207 = vector.broadcast %206 : vector<8x1xf32> to vector<8x32xf32>
    %208 = arith.mulf %203, %207 : vector<8x32xf32>
    %209 = vector.broadcast %188 : vector<1x32xf32> to vector<8x32xf32>
    %210 = arith.mulf %208, %209 : vector<8x32xf32>
    %211 = vector.broadcast %190 : vector<1x32xf32> to vector<8x32xf32>
    %212 = arith.addf %210, %211 : vector<8x32xf32>
    %c1_113 = arith.constant 1 : index
    %c0_114 = arith.constant 0 : index
    %c0_115 = arith.constant 0 : index
    %213 = vector.load %arg11[%c1_113, %c0_114, %c0_115] : memref<2x32x64xf32, #tpu.memory_space<vmem>>, vector<1x32x64xf32>
    %214 = vector.shape_cast %213 : vector<1x32x64xf32> to vector<32x64xf32>
    %cst_116 = arith.constant dense<0.000000e+00> : vector<8x64xf32>
    %215 = tpu.matmul %212, %214, %cst_116 {dimension_numbers = #tpu.dot_dimension_numbers<[1], [0], [0], [1], [0, 0, 1, 1], [], []>} : vector<8x32xf32>, vector<32x64xf32>, vector<8x64xf32> -> vector<8x64xf32>
    %c1_117 = arith.constant 1 : index
    %c0_118 = arith.constant 0 : index
    %c0_119 = arith.constant 0 : index
    %216 = vector.load %arg12[%c1_117, %c0_118, %c0_119] : memref<2x1x64xf32, #tpu.memory_space<vmem>>, vector<1x1x64xf32>
    %217 = vector.shape_cast %216 : vector<1x1x64xf32> to vector<1x64xf32>
    %218 = vector.broadcast %217 : vector<1x64xf32> to vector<8x64xf32>
    %219 = arith.addf %215, %218 : vector<8x64xf32>
    %220 = arith.negf %219 : vector<8x64xf32>
    %221 = math.exp %220 : vector<8x64xf32>
    %cst_120 = arith.constant 1.000000e+00 : f32
    %222 = vector.broadcast %cst_120 : f32 to vector<8x64xf32>
    %223 = arith.addf %222, %221 : vector<8x64xf32>
    %224 = arith.divf %222, %223 : vector<8x64xf32>
    %225 = arith.mulf %219, %224 : vector<8x64xf32>
    %c1_121 = arith.constant 1 : index
    %c0_122 = arith.constant 0 : index
    %c0_123 = arith.constant 0 : index
    %226 = vector.load %arg13[%c1_121, %c0_122, %c0_123] : memref<2x64x32xf32, #tpu.memory_space<vmem>>, vector<1x64x32xf32>
    %227 = vector.shape_cast %226 : vector<1x64x32xf32> to vector<64x32xf32>
    %cst_124 = arith.constant dense<0.000000e+00> : vector<8x32xf32>
    %228 = tpu.matmul %225, %227, %cst_124 {dimension_numbers = #tpu.dot_dimension_numbers<[1], [0], [0], [1], [0, 0, 1, 1], [], []>} : vector<8x64xf32>, vector<64x32xf32>, vector<8x32xf32> -> vector<8x32xf32>
    %c1_125 = arith.constant 1 : index
    %c0_126 = arith.constant 0 : index
    %c0_127 = arith.constant 0 : index
    %229 = vector.load %arg14[%c1_125, %c0_126, %c0_127] : memref<2x1x32xf32, #tpu.memory_space<vmem>>, vector<1x1x32xf32>
    %230 = vector.shape_cast %229 : vector<1x1x32xf32> to vector<1x32xf32>
    %231 = vector.broadcast %230 : vector<1x32xf32> to vector<8x32xf32>
    %232 = arith.addf %228, %231 : vector<8x32xf32>
    %233 = arith.addf %186, %232 : vector<8x32xf32>
    %c0_128 = arith.constant 0 : index
    %c0_129 = arith.constant 0 : index
    %234 = vector.load %arg15[%c0_128, %c0_129] : memref<1x32xf32, #tpu.memory_space<vmem>>, vector<1x32xf32>
    %c0_130 = arith.constant 0 : index
    %c0_131 = arith.constant 0 : index
    %235 = vector.load %arg16[%c0_130, %c0_131] : memref<1x32xf32, #tpu.memory_space<vmem>>, vector<1x32xf32>
    %cst_132 = arith.constant dense<0.000000e+00> : vector<8xf32>
    %236 = vector.multi_reduction <add>, %233, %cst_132 [1] : vector<8x32xf32> to vector<8xf32>
    %237 = vector.shape_cast %236 : vector<8xf32> to vector<8x1xf32>
    %cst_133 = arith.constant 3.200000e+01 : f32
    %238 = vector.broadcast %cst_133 : f32 to vector<8x1xf32>
    %239 = arith.divf %237, %238 : vector<8x1xf32>
    %240 = vector.broadcast %239 : vector<8x1xf32> to vector<8x32xf32>
    %241 = arith.subf %233, %240 : vector<8x32xf32>
    %242 = arith.mulf %241, %241 : vector<8x32xf32>
    %cst_134 = arith.constant dense<0.000000e+00> : vector<8xf32>
    %243 = vector.multi_reduction <add>, %242, %cst_134 [1] : vector<8x32xf32> to vector<8xf32>
    %244 = vector.shape_cast %243 : vector<8xf32> to vector<8x1xf32>
    %cst_135 = arith.constant 3.200000e+01 : f32
    %245 = vector.broadcast %cst_135 : f32 to vector<8x1xf32>
    %246 = arith.divf %244, %245 : vector<8x1xf32>
    %247 = vector.broadcast %239 : vector<8x1xf32> to vector<8x32xf32>
    %248 = arith.subf %233, %247 : vector<8x32xf32>
    %cst_136 = arith.constant 9.99999974E-6 : f32
    %249 = vector.broadcast %cst_136 : f32 to vector<8x1xf32>
    %250 = arith.addf %246, %249 : vector<8x1xf32>
    %251 = math.rsqrt %250 : vector<8x1xf32>
    %252 = vector.broadcast %251 : vector<8x1xf32> to vector<8x32xf32>
    %253 = arith.mulf %248, %252 : vector<8x32xf32>
    %254 = vector.broadcast %234 : vector<1x32xf32> to vector<8x32xf32>
    %255 = arith.mulf %253, %254 : vector<8x32xf32>
    %256 = vector.broadcast %235 : vector<1x32xf32> to vector<8x32xf32>
    %257 = arith.addf %255, %256 : vector<8x32xf32>
    %c0_137 = arith.constant 0 : index
    %c0_138 = arith.constant 0 : index
    %c0_139 = arith.constant 0 : index
    %258 = vector.load %arg17[%c0_137, %c0_138, %c0_139] : memref<1x8x32xf32, #tpu.memory_space<vmem>>, vector<1x8x32xf32>
    %259 = vector.shape_cast %258 : vector<1x8x32xf32> to vector<8x32xf32>
    %260 = vector.shape_cast %257 : vector<8x32xf32> to vector<1x8x32xf32>
    tpu.vector_store %arg17[%c0_137, %c0_138, %c0_139], %260 {strides = array<i32>} : memref<1x8x32xf32, #tpu.memory_space<vmem>>, vector<1x8x32xf32>,
    return
  }
  func.func @transform_0(%arg0: i32) -> (i32, i32, i32) {
    %c0_i32 = arith.constant 0 : i32
    %c0_i32_0 = arith.constant 0 : i32
    %c0_i32_1 = arith.constant 0 : i32
    return %arg0, %c0_i32, %c0_i32_0 : i32, i32, i32
  }
  func.func @transform_1(%arg0: i32) -> (i32, i32, i32) {
    %c0_i32 = arith.constant 0 : i32
    %c0_i32_0 = arith.constant 0 : i32
    %c0_i32_1 = arith.constant 0 : i32
    return %arg0, %c0_i32, %c0_i32_0 : i32, i32, i32
  }
  func.func @transform_2(%arg0: i32) -> (i32, i32, i32, i32) {
    %c0_i32 = arith.constant 0 : i32
    %c0_i32_0 = arith.constant 0 : i32
    %c0_i32_1 = arith.constant 0 : i32
    %c0_i32_2 = arith.constant 0 : i32
    %c0_i32_3 = arith.constant 0 : i32
    return %c0_i32, %c0_i32_0, %c0_i32_1, %c0_i32_2 : i32, i32, i32, i32
  }
  func.func @transform_3(%arg0: i32) -> (i32, i32, i32, i32) {
    %c0_i32 = arith.constant 0 : i32
    %c0_i32_0 = arith.constant 0 : i32
    %c0_i32_1 = arith.constant 0 : i32
    %c0_i32_2 = arith.constant 0 : i32
    %c0_i32_3 = arith.constant 0 : i32
    return %c0_i32, %c0_i32_0, %c0_i32_1, %c0_i32_2 : i32, i32, i32, i32
  }
  func.func @transform_4(%arg0: i32) -> (i32, i32, i32, i32) {
    %c0_i32 = arith.constant 0 : i32
    %c0_i32_0 = arith.constant 0 : i32
    %c0_i32_1 = arith.constant 0 : i32
    %c0_i32_2 = arith.constant 0 : i32
    %c0_i32_3 = arith.constant 0 : i32
    return %c0_i32, %c0_i32_0, %c0_i32_1, %c0_i32_2 : i32, i32, i32, i32
  }
  func.func @transform_5(%arg0: i32) -> (i32, i32, i32) {
    %c0_i32 = arith.constant 0 : i32
    %c0_i32_0 = arith.constant 0 : i32
    %c0_i32_1 = arith.constant 0 : i32
    %c0_i32_2 = arith.constant 0 : i32
    return %c0_i32, %c0_i32_0, %c0_i32_1 : i32, i32, i32
  }
  func.func @transform_6(%arg0: i32) -> (i32, i32, i32) {
    %c0_i32 = arith.constant 0 : i32
    %c0_i32_0 = arith.constant 0 : i32
    %c0_i32_1 = arith.constant 0 : i32
    %c0_i32_2 = arith.constant 0 : i32
    return %c0_i32, %c0_i32_0, %c0_i32_1 : i32, i32, i32
  }
  func.func @transform_7(%arg0: i32) -> (i32, i32, i32) {
    %c0_i32 = arith.constant 0 : i32
    %c0_i32_0 = arith.constant 0 : i32
    %c0_i32_1 = arith.constant 0 : i32
    %c0_i32_2 = arith.constant 0 : i32
    return %c0_i32, %c0_i32_0, %c0_i32_1 : i32, i32, i32
  }
  func.func @transform_8(%arg0: i32) -> (i32, i32, i32) {
    %c0_i32 = arith.constant 0 : i32
    %c0_i32_0 = arith.constant 0 : i32
    %c0_i32_1 = arith.constant 0 : i32
    %c0_i32_2 = arith.constant 0 : i32
    return %c0_i32, %c0_i32_0, %c0_i32_1 : i32, i32, i32
  }
  func.func @transform_9(%arg0: i32) -> (i32, i32, i32) {
    %c0_i32 = arith.constant 0 : i32
    %c0_i32_0 = arith.constant 0 : i32
    %c0_i32_1 = arith.constant 0 : i32
    %c0_i32_2 = arith.constant 0 : i32
    return %c0_i32, %c0_i32_0, %c0_i32_1 : i32, i32, i32
  }
  func.func @transform_10(%arg0: i32) -> (i32, i32, i32) {
    %c0_i32 = arith.constant 0 : i32
    %c0_i32_0 = arith.constant 0 : i32
    %c0_i32_1 = arith.constant 0 : i32
    %c0_i32_2 = arith.constant 0 : i32
    return %c0_i32, %c0_i32_0, %c0_i32_1 : i32, i32, i32
  }
  func.func @transform_11(%arg0: i32) -> (i32, i32, i32) {
    %c0_i32 = arith.constant 0 : i32
    %c0_i32_0 = arith.constant 0 : i32
    %c0_i32_1 = arith.constant 0 : i32
    %c0_i32_2 = arith.constant 0 : i32
    return %c0_i32, %c0_i32_0, %c0_i32_1 : i32, i32, i32
  }
  func.func @transform_12(%arg0: i32) -> (i32, i32, i32) {
    %c0_i32 = arith.constant 0 : i32
    %c0_i32_0 = arith.constant 0 : i32
    %c0_i32_1 = arith.constant 0 : i32
    %c0_i32_2 = arith.constant 0 : i32
    return %c0_i32, %c0_i32_0, %c0_i32_1 : i32, i32, i32
  }
  func.func @transform_13(%arg0: i32) -> (i32, i32, i32) {
    %c0_i32 = arith.constant 0 : i32
    %c0_i32_0 = arith.constant 0 : i32
    %c0_i32_1 = arith.constant 0 : i32
    %c0_i32_2 = arith.constant 0 : i32
    return %c0_i32, %c0_i32_0, %c0_i32_1 : i32, i32, i32
  }
  func.func @transform_14(%arg0: i32) -> (i32, i32) {
    %c0_i32 = arith.constant 0 : i32
    %c0_i32_0 = arith.constant 0 : i32
    %c0_i32_1 = arith.constant 0 : i32
    return %c0_i32, %c0_i32_0 : i32, i32
  }
  func.func @transform_15(%arg0: i32) -> (i32, i32) {
    %c0_i32 = arith.constant 0 : i32
    %c0_i32_0 = arith.constant 0 : i32
    %c0_i32_1 = arith.constant 0 : i32
    return %c0_i32, %c0_i32_0 : i32, i32
  }
  func.func @transform_16(%arg0: i32) -> (i32, i32, i32) {
    %c0_i32 = arith.constant 0 : i32
    %c0_i32_0 = arith.constant 0 : i32
    %c0_i32_1 = arith.constant 0 : i32
    return %arg0, %c0_i32, %c0_i32_0 : i32, i32, i32
  }
}

</mosaic_0001>

<bundles_post_ra>
// kernel: tpu_custom_call.1
= control target key start
LH: loop header
LB: loop body
LE: loop exit
PB: predicated region body
PF: predicated region fallthrough
CT: control target
= control target key end

     0   :  { %s7306_s0 = inlined_call_operand.vmem [shape: f32[2,8,32], index: 0, kind: input, shape index: {}]   ;;  %s7307_s1 = inlined_call_operand.vmem [shape: f32[2,8,8], index: 1, kind: input, shape index: {}]   ;;  %s7308_s2 = inlined_call_operand.vmem [shape: f32[2,12,32,8], index: 2, kind: input, shape index: {}]   ;;  %s7309_s3 = inlined_call_operand.vmem [shape: f32[2,12,1,8], index: 3, kind: input, shape index: {}]   ;;  %s7310_s4 = inlined_call_operand.vmem [shape: f32[2,4,8,32], index: 4, kind: input, shape index: {}]   ;;  %s7311_s5 = inlined_call_operand.vmem [shape: f32[2,1,32], index: 5, kind: input, shape index: {}]   ;;  %s7312_s6 = inlined_call_operand.vmem [shape: f32[2,1,32], index: 6, kind: input, shape index: {}]   ;;  %s7313_s7 = inlined_call_operand.vmem [shape: f32[2,1,32], index: 7, kind: input, shape index: {}]   ;;  %s7314_s8 = inlined_call_operand.vmem [shape: f32[2,1,32], index: 8, kind: input, shape index: {}]   ;;  %s7315_s9 = inlined_call_operand.vmem [shape: f32[2,1,32], index: 9, kind: input, shape index: {}]   ;;  %s7316_s10 = inlined_call_operand.vmem [shape: f32[2,32,64], index: 10, kind: input, shape index: {}]   ;;  %s7317_s11 = inlined_call_operand.vmem [shape: f32[2,1,64], index: 11, kind: input, shape index: {}]   ;;  %s7318_s12 = inlined_call_operand.vmem [shape: f32[2,64,32], index: 12, kind: input, shape index: {}]   ;;  %s7319_s13 = inlined_call_operand.vmem [shape: f32[2,1,32], index: 13, kind: input, shape index: {}]   ;;  %s7320_s14 = inlined_call_operand.vmem [shape: f32[1,32], index: 14, kind: input, shape index: {}]   ;;  %s7321_s15 = inlined_call_operand.vmem [shape: f32[1,32], index: 15, kind: input, shape index: {}]   ;;  %s7322_s16 = inlined_call_operand.hbm [shape: f32[2,8,32], index: 16, kind: output, shape index: {}]  }
   0x1   :  { %7330 = sst [smem:[#allocation11_spill]] %s7306_s0 }
   0x2   :  { %21 = vsyncpa [#allocation3], 0 }
   0x3   :  { %23 = vsyncpa [#allocation3 + $0x1], 0  ;;  %s6331_s21 = smov 0   ;;  %s6333_s22 = smov 0  }
   0x4   :  { %s6335_s23 = smov 0   ;;  %s6337_s24 = smov 0  }
   0x5 LB: > { %7331 = sst [smem:[#allocation5_spill]] %s6228_s21  ;;  %s6352_s25 = sadd.s32 4294967295, %s6240_s24   ;;  %s6240_s24 = sphi %s6337_s24, %s7344_s24   ;;  %s6236_s23 = sphi %s6335_s23, %s7346_s23   ;;  %s6232_s22 = sphi %s6333_s22, %s7348_s22   ;;  %s6228_s21 = sphi %s6331_s21, %s7347_s21  }
   0x6   : > { %7332 = sst [smem:[#allocation6_spill]] %s6236_s23  ;;  %s5054_s26 = sadd.s32 4294967294, %s6240_s24  }
   0x7   : > { %7333 = sst [smem:[#allocation7_spill]] %s6240_s24  ;;  %s6356_s27 = sadd.s32 1, %s6240_s24  }
   0x8   : > { %7334 = sst [smem:[#allocation8_spill]] %s6356_s27  ;;  %s382_s28 = sadd.s32 1, %s6236_s23 }
   0x9   : > { %s379_s29 = ssub.s32 %s6240_s24, %s6356_s27  ;;  %p392_p0 = scmp.ne.s32.totalorder %s6236_s23, %s6232_s22 }
   0xa   : > { %p380_p1 = scmp.eq.s32.totalorder %s379_s29, 0  ;;  %p393_p2 = scmp.eq.s32.totalorder %s6352_s25, 1 }
   0xb   : > { %p398_p3 = scmp.ne.s32.totalorder %s6232_s22, %s6228_s21  ;;  %p399_p4 = scmp.eq.s32.totalorder %s5054_s26, 1 }
   0xc   : > { %s6367_s30 = scalar_select %p380_p1, %s6236_s23, %s382_s28  }
   0xd   : > { %p6369_p5 = por %p393_p2, %p392_p0  ;;  %p6373_p6 = por %p399_p4, %p398_p3 }
   0xe   : > { %7335 = sst [smem:[#allocation9_spill]] %s6367_s30  ;;  %p5057_p7 = scmp.ge.s32.totalorder %s6240_s24, 1 }
   0xf   : > { %s7337_s17 = scalar_select %p6373_p6, 1, 0 }
  0x10   : > { %p473_p8 = scmp.lt.s32.totalorder %s6240_s24, 3 }
  0x11   : > { %7338 = sst [smem:[#allocation10_spill]] %s7337_s17 }
  0x12   : > { %p474_p9 = pnand %p5057_p7, %p473_p8 }
  0x13   : > { %p526_p10 = scmp.lt.s32.totalorder (!%p474_p9), %s6352_s25, 1  ;;  %vm537_vm0 = vcmask (!%p474_p9), 261120   ;;  %s7339_s28 = sld [smem:[#allocation11_spill]] (!%p474_p9)  ;;  %v566_v7 = vld [vmem:[%s7308_s2] sm:$0xff] (!%p474_p9)  ;;  %v567_v8 = vld [vmem:[%s7308_s2 + $0x8] sm:$0xff] (!%p474_p9)  ;;  %v6242_v12 = vmov (!%p474_p9), 0.0|0.0  }
  0x14   : > { %477 = sbr.rel (%p474_p9) target bundleno = 5254 (0x1486), region = 84  ;;  %v570_v9 = vld [vmem:[%s7308_s2 + $0x20] sm:$0xff] (!%p474_p9)  ;;  %v5891_v10 = vpack.c.bf16 (!%p474_p9), %v567_v8, %v566_v7  ;;  %v571_v11 = vld [vmem:[%s7308_s2 + $0x28] sm:$0xff] (!%p474_p9)  ;;  %5890 = vmatprep.subr.bf16.mxu0 (!%p474_p9), %v6242_v12  ;;  %5896 = vmatprep.subr.bf16.mxu1 (!%p474_p9), %v6242_v12  ;;  %v568_v14 = vld [vmem:[%s7308_s2 + $0x10] sm:$0xff] (!%p474_p9)  ;;  %vm6243_vm1 = vmmov (!%p474_p9), 0   ;;  %v6244_v20 = vmov (!%p474_p9), 0.0  }
  0x15   : > { %v5897_v13 = vpack.c.bf16 (!%p474_p9), %v571_v11, %v570_v9  ;;  %v569_v15 = vld [vmem:[%s7308_s2 + $0x18] sm:$0xff] (!%p474_p9)  ;;  %v572_v16 = vld [vmem:[%s7308_s2 + $0x30] sm:$0xff] (!%p474_p9)  ;;  %5454 = vmatprep.mubr.msk.f32.mxu0 (!%p474_p9), %vm6243_vm1, %v6244_v20  ;;  %5465 = vmatprep.mubr.msk.f32.mxu1 (!%p474_p9), %vm6243_vm1, %v6244_v20  ;;  %v5061_v25 = vld [vmem:[%s7312_s6] ss:$0 sm:$0xff] (!%p474_p9)  ;;  %vm1541_vm2 = vcmask (!%p474_p9), 64512   ;;  %vm2658_vm3 = vcmask (!%p474_p9), 523264  }
  0x16   : > { %5892 = vmatpush3.bf16.msra.mxu0 (!%p474_p9), %v5891_v10  ;;  %v5894_v17 = vpack.c.bf16 (!%p474_p9), %v569_v15, %v568_v14  ;;  %v573_v18 = vld [vmem:[%s7308_s2 + $0x38] sm:$0xff] (!%p474_p9)  ;;  %v574_v26 = vld [vmem:[%s7308_s2 + $0x40] sm:$0xff] (!%p474_p9)  ;;  %v575_v28 = vld [vmem:[%s7308_s2 + $0x48] sm:$0xff] (!%p474_p9) }
  0x17   : > { %5898 = vmatpush3.bf16.msra.mxu1 (!%p474_p9), %v5897_v13  ;;  %5893 = vmatprep.subr.bf16.mxu0 (!%p474_p9), %v6242_v12  ;;  %v5900_v19 = vpack.c.bf16 (!%p474_p9), %v573_v18, %v572_v16  ;;  %v578_v29 = vld [vmem:[%s7308_s2 + $0x60] sm:$0xff] (!%p474_p9)  ;;  %v579_v30 = vld [vmem:[%s7308_s2 + $0x68] sm:$0xff] (!%p474_p9)  ;;  %v5903_v33 = vpack.c.bf16 (!%p474_p9), %v575_v28, %v574_v26  ;;  %v576_v35 = vld [vmem:[%s7308_s2 + $0x50] sm:$0xff] (!%p474_p9) }
  0x18   : > { %5899 = vmatprep.subr.bf16.mxu1 (!%p474_p9), %v6242_v12  ;;  %v5062_v31 = vld [vmem:[%s7313_s7] ss:$0 sm:$0xff] (!%p474_p9)  ;;  %v5909_v34 = vpack.c.bf16 (!%p474_p9), %v579_v30, %v578_v29  ;;  %v577_v37 = vld [vmem:[%s7308_s2 + $0x58] sm:$0xff] (!%p474_p9)  ;;  %v580_v38 = vld [vmem:[%s7308_s2 + $0x70] sm:$0xff] (!%p474_p9) }
  0x19   : > { %v581_v39 = vld [vmem:[%s7308_s2 + $0x78] sm:$0xff] (!%p474_p9)  ;;  %v5906_v40 = vpack.c.bf16 (!%p474_p9), %v577_v37, %v576_v35  ;;  %v582_v42 = vld [vmem:[%s7308_s2 + $0x80] sm:$0xff] (!%p474_p9)  ;;  %v583_v43 = vld [vmem:[%s7308_s2 + $0x88] sm:$0xff] (!%p474_p9) }
  0x1a   : > { %5895 = vmatpush3.bf16.msra.mxu0 (!%p474_p9), %v5894_v17  ;;  %v5912_v41 = vpack.c.bf16 (!%p474_p9), %v581_v39, %v580_v38  ;;  %v586_v44 = vld [vmem:[%s7308_s2 + $0xa0] sm:$0xff] (!%p474_p9)  ;;  %v587_v45 = vld [vmem:[%s7308_s2 + $0xa8] sm:$0xff] (!%p474_p9)  ;;  %v5915_v46 = vpack.c.bf16 (!%p474_p9), %v583_v43, %v582_v42  ;;  %v584_v48 = vld [vmem:[%s7308_s2 + $0x90] sm:$0xff] (!%p474_p9) }
  0x1b   : > { %s6381_s18 = scalar_select %p526_p10, %s6352_s25, 1  ;;  %5901 = vmatpush3.bf16.msra.mxu1 %v5900_v19  ;;  %5902 = vmatprep.subr.bf16.mxu0 %v6242_v12  ;;  %v5921_v47 = vpack.c.bf16 %v587_v45, %v586_v44  ;;  %v585_v49 = vld [vmem:[%s7308_s2 + $0x98] sm:$0xff]  ;;  %v588_v50 = vld [vmem:[%s7308_s2 + $0xb0] sm:$0xff]  ;;  %v590_v54 = vld [vmem:[%s7308_s2 + $0xc0] sm:$0xff] }
  0x1c   : > { %5908 = vmatprep.subr.bf16.mxu1 %v6242_v12  ;;  %v589_v51 = vld [vmem:[%s7308_s2 + $0xb8] sm:$0xff]  ;;  %v5918_v52 = vpack.c.bf16 %v585_v49, %v584_v48  ;;  %v591_v55 = vld [vmem:[%s7308_s2 + $0xc8] sm:$0xff]  ;;  %v594_v56 = vld [vmem:[%s7308_s2 + $0xe0] sm:$0xff] }
  0x1d   : > { %s7324_s19 = sshll.u32 %s6381_s18, 3  ;;  %v5924_v53 = vpack.c.bf16 %v589_v51, %v588_v50  ;;  %v595_v57 = vld [vmem:[%s7308_s2 + $0xe8] sm:$0xff]  ;;  %v5927_v58 = vpack.c.bf16 %v591_v55, %v590_v54  ;;  %v592_v60 = vld [vmem:[%s7308_s2 + $0xd0] sm:$0xff]  ;;  %v593_v61 = vld [vmem:[%s7308_s2 + $0xd8] sm:$0xff] }
  0x1e   : > { %s529_s29 = scalar_lea.vmem %s7339_s28, %s7324_s19  ;;  %v5933_v59 = vpack.c.bf16 %v595_v57, %v594_v56  ;;  %v596_v62 = vld [vmem:[%s7308_s2 + $0xf0] sm:$0xff]  ;;  %v597_v63 = vld [vmem:[%s7308_s2 + $0xf8] sm:$0xff]  ;;  %v606_v16 = vld [vmem:[%s7308_s2 + $0x140] sm:$0xff]  ;;  %s7340_s19 = sshll.u32 %s6381_s18, 3 }
  0x1f   : > { %v6389_v0 = vld [vmem:[%s529_s29] sm:$0xff]  ;;  %v600_v9 = vld [vmem:[%s7308_s2 + $0x110] sm:$0xff]  ;;  %v601_v10 = vld [vmem:[%s7308_s2 + $0x118] sm:$0xff]  ;;  %s533_s24 = scalar_lea.vmem %s7307_s1, %s7340_s19  ;;  %s523_s19 = sand.u32 1, %s6232_s22  }
  0x20   : > { %v538_v1 = vsel %vm537_vm0, %v6389_v0, 0.0  ;;  %v604_v11 = vld [vmem:[%s7308_s2 + $0x130] sm:$0xff]  ;;  %v605_v13 = vld [vmem:[%s7308_s2 + $0x138] sm:$0xff]  ;;  %v5942_v14 = vpack.c.bf16 %v601_v10, %v600_v9  ;;  %v607_v17 = vld [vmem:[%s7308_s2 + $0x148] sm:$0xff]  ;;  %s5058_s21 = sshll.u32 %s523_s19, 3  ;;  %s5247_s29 = sshll.u32 %s6352_s25, 7 }
  0x21   : > { %539 = vadd.xlane.f32.xlu0 %v538_v1  ;;  %v5930_v1 = vpack.c.bf16 %v593_v61, %v592_v60  ;;  %v5948_v15 = vpack.c.bf16 %v605_v13, %v604_v11  ;;  %v610_v18 = vld [vmem:[%s7308_s2 + $0x160] sm:$0xff]  ;;  %v611_v19 = vld [vmem:[%s7308_s2 + $0x168] sm:$0xff]  ;;  %v613_v26 = vld [vmem:[%s7308_s2 + $0x178] sm:$0xff]  ;;  %s525_s23 = scalar_lea.vmem [#allocation2], %s5058_s21  ;;  %s7263_s27 = scalar_lea.hbm %s7322_s16, %s5247_s29 }
  0x22   : > { %v5067_v38 = vld [vmem:[%s7309_s3 + $0x4] ss:$0 sm:$0xff]  ;;  %v5068_v44 = vld [vmem:[%s7309_s3 + $0x5] ss:$0 sm:$0xff]  ;;  %v5069_v48 = vld [vmem:[%s7309_s3 + $0x6] ss:$0 sm:$0xff] }
  0x23   : > { %v5070_v49 = vld [vmem:[%s7309_s3 + $0x7] ss:$0 sm:$0xff]  ;;  %v5066_v54 = vld [vmem:[%s7309_s3 + $0x3] ss:$0 sm:$0xff]  ;;  %v5071_v61 = vld [vmem:[%s7309_s3 + $0x8] ss:$0 sm:$0xff] }
  0x24   : > { %s4983_s30 = sshll.u32 %s525_s23, 4  ;;  %s4970_s17 = scalar_lea.sflag [#allocation3], %s523_s19  ;;  %s7265_s30 = int_to_ptr.vmem [resolvable:$true] %s4983_s30 }
  0x25   : > { %s6245_s25 = smov [#allocation2]  }
  0x26   : > { %s6182_s21 = sshll.u32 %s6245_s25, 4  ;;  %s6183_s21 = int_to_ptr.vmem [resolvable:$false] %s6182_s21 }
  0x27   : > { %s6184_s18 = scalar_lea.vmem %s6183_s21, 256  ;;  %p6185_p0 = scmp.lt.s32.totalorder %s7265_s30, %s6183_s21 }
  0xae   : > { %v540_v2 = vpop.xlane.xlu0 %539 }
  0xaf   : > { %v542_v3 = vmul.f32 0.03125, %v540_v2  ;;  %v5936_v2 = vpack.c.bf16 %v597_v63, %v596_v62  ;;  %v5072_v62 = vld [vmem:[%s7309_s3 + $0x9] ss:$0 sm:$0xff] }
  0xb1   : > { %v543_v4 = vsub.f32 %v6389_v0, %v542_v3  ;;  %v598_v3 = vld [vmem:[%s7308_s2 + $0x100] sm:$0xff] }
  0xb3   : > { %v544_v5 = vmul.f32 %v543_v4, %v543_v4 }
  0xb5   : > { %v545_v6 = vsel %vm537_vm0, %v544_v5, 0.0  ;;  %v602_v5 = vld [vmem:[%s7308_s2 + $0x120] sm:$0xff] }
  0xb6   : > { %546 = vadd.xlane.f32.xlu0 %v545_v6  ;;  %v603_v6 = vld [vmem:[%s7308_s2 + $0x128] sm:$0xff] }
  0xb7   : > { %v5945_v8 = vpack.c.bf16 %v603_v6, %v602_v5 }
 0x143   : > { %v547_v21 = vpop.xlane.xlu0 %546 }
 0x144   : > { %v548_v22 = vmul.f32 0.03125, %v547_v21  ;;  %v5951_v21 = vpack.c.bf16 %v607_v17, %v606_v16 }
 0x146   : > { %v549_v23 = vadd.f32 1e-05, %v548_v22  ;;  %v5957_v22 = vpack.c.bf16 %v611_v19, %v610_v18 }
 0x148   : > { %6112 = vrsqrt.f32 %v549_v23  ;;  %v608_v23 = vld [vmem:[%s7308_s2 + $0x150] sm:$0xff] }
 0x152   : > { %v6113_v24 = vpop.eup %6112 }
 0x153   : > { %v551_v27 = vmul.f32 %v6113_v24, %v543_v4  ;;  %v599_v4 = vld [vmem:[%s7308_s2 + $0x108] sm:$0xff]  ;;  %v609_v24 = vld [vmem:[%s7308_s2 + $0x158] sm:$0xff] }
 0x154   : > { %v5939_v7 = vpack.c.bf16 %v599_v4, %v598_v3 }
 0x155   : > { %v558_v32 = vmul.f32 %v5061_v25, %v551_v27  ;;  %v612_v25 = vld [vmem:[%s7308_s2 + $0x170] sm:$0xff]  ;;  %v5954_v27 = vpack.c.bf16 %v609_v24, %v608_v23 }
 0x156   : > { %v5960_v28 = vpack.c.bf16 %v613_v26, %v612_v25 }
 0x157   : > { %v6450_v36 = vadd.f32 %v5062_v31, %v558_v32 }
 0x159   : > { %5455 = vmatmul.mubr.msk.f32.vlgmr.msra.gmra.mrb[0].mxu0 %vm537_vm0, %v6450_v36  ;;  %5466 = vmatmul.mubr.msk.f32.vlgmr.msra.gmra.mrb[0].mxu1 %vm537_vm0, %v6450_v36 }
 0x15a   : > { %5904 = vmatpush3.bf16.msra.mxu0 %v5903_v33  ;;  %5910 = vmatpush3.bf16.msra.mxu1 %v5909_v34 }
 0x15b   : > { %5905 = vmatprep.subr.bf16.mxu0 %v6242_v12  ;;  %5911 = vmatprep.subr.bf16.mxu1 %v6242_v12 }
 0x15c   : > { %5476 = vmatprep.mubr.msk.f32.mxu0 %vm6243_vm1, %v6244_v20  ;;  %5487 = vmatprep.mubr.msk.f32.mxu1 %vm6243_vm1, %v6244_v20 }
 0x15e   : > { %5907 = vmatpush3.bf16.msra.mxu0 %v5906_v40  ;;  %5913 = vmatpush3.bf16.msra.mxu1 %v5912_v41  ;;  %v5063_v40 = vld [vmem:[%s7309_s3] ss:$0 sm:$0xff] }
 0x15f   : > { %5914 = vmatprep.subr.bf16.mxu0 %v6242_v12  ;;  %5920 = vmatprep.subr.bf16.mxu1 %v6242_v12 }
 0x161   : > { %5477 = vmatmul.mubr.msk.f32.vlgmr.msra.gmra.mrb[2].mxu0 %vm537_vm0, %v6450_v36  ;;  %5488 = vmatmul.mubr.msk.f32.vlgmr.msra.gmra.mrb[2].mxu1 %vm537_vm0, %v6450_v36 }
 0x162   : > { %5916 = vmatpush3.bf16.msra.mxu0 %v5915_v46  ;;  %5922 = vmatpush3.bf16.msra.mxu1 %v5921_v47  ;;  %v5064_v46 = vld [vmem:[%s7309_s3 + $0x1] ss:$0 sm:$0xff] }
 0x163   : > { %5917 = vmatprep.subr.bf16.mxu0 %v6242_v12  ;;  %5923 = vmatprep.subr.bf16.mxu1 %v6242_v12 }
 0x164   : > { %5498 = vmatprep.mubr.msk.f32.mxu0 %vm6243_vm1, %v6244_v20  ;;  %5509 = vmatprep.mubr.msk.f32.mxu1 %vm6243_vm1, %v6244_v20 }
 0x166   : > { %5919 = vmatpush3.bf16.msra.mxu0 %v5918_v52  ;;  %5925 = vmatpush3.bf16.msra.mxu1 %v5924_v53  ;;  %v5065_v53 = vld [vmem:[%s7309_s3 + $0x2] ss:$0 sm:$0xff] }
 0x167   : > { %5926 = vmatprep.subr.bf16.mxu0 %v6242_v12  ;;  %5932 = vmatprep.subr.bf16.mxu1 %v6242_v12 }
 0x169   : > { %5499 = vmatmul.mubr.msk.f32.vlgmr.msra.gmra.mrb[4].mxu0 %vm537_vm0, %v6450_v36  ;;  %5510 = vmatmul.mubr.msk.f32.vlgmr.msra.gmra.mrb[4].mxu1 %vm537_vm0, %v6450_v36 }
 0x16a   : > { %5928 = vmatpush3.bf16.msra.mxu0 %v5927_v58  ;;  %5934 = vmatpush3.bf16.msra.mxu1 %v5933_v59 }
 0x16b   : > { %5929 = vmatprep.subr.bf16.mxu0 %v6242_v12  ;;  %5935 = vmatprep.subr.bf16.mxu1 %v6242_v12 }
 0x16c   : > { %5520 = vmatprep.mubr.msk.f32.mxu0 %vm6243_vm1, %v6244_v20  ;;  %5531 = vmatprep.mubr.msk.f32.mxu1 %vm6243_vm1, %v6244_v20 }
 0x16e   : > { %5931 = vmatpush3.bf16.msra.mxu0 %v5930_v1  ;;  %5937 = vmatpush3.bf16.msra.mxu1 %v5936_v2 }
 0x16f   : > { %5938 = vmatprep.subr.bf16.mxu0 %v6242_v12  ;;  %5944 = vmatprep.subr.bf16.mxu1 %v6242_v12 }
 0x171   : > { %5521 = vmatmul.mubr.msk.f32.vlgmr.msra.gmra.mrb[6].mxu0 %vm537_vm0, %v6450_v36  ;;  %5532 = vmatmul.mubr.msk.f32.vlgmr.msra.gmra.mrb[6].mxu1 %vm537_vm0, %v6450_v36 }
 0x172   : > { %5940 = vmatpush3.bf16.msra.mxu0 %v5939_v7  ;;  %5946 = vmatpush3.bf16.msra.mxu1 %v5945_v8 }
 0x173   : > { %5941 = vmatprep.subr.bf16.mxu0 %v6242_v12  ;;  %5947 = vmatprep.subr.bf16.mxu1 %v6242_v12 }
 0x174   : > { %5542 = vmatprep.mubr.msk.f32.mxu0 %vm6243_vm1, %v6244_v20  ;;  %5553 = vmatprep.mubr.msk.f32.mxu1 %vm6243_vm1, %v6244_v20 }
 0x176   : > { %5943 = vmatpush3.bf16.msra.mxu0 %v5942_v14  ;;  %5949 = vmatpush3.bf16.msra.mxu1 %v5948_v15 }
 0x177   : > { %5950 = vmatprep.subr.bf16.mxu0 %v6242_v12  ;;  %5956 = vmatprep.subr.bf16.mxu1 %v6242_v12 }
 0x179   : > { %5543 = vmatmul.mubr.msk.f32.vlgmr.msra.gmra.mrb[8].mxu0 %vm537_vm0, %v6450_v36  ;;  %5554 = vmatmul.mubr.msk.f32.vlgmr.msra.gmra.mrb[8].mxu1 %vm537_vm0, %v6450_v36 }
 0x17a   : > { %5952 = vmatpush3.bf16.msra.mxu0 %v5951_v21  ;;  %5958 = vmatpush3.bf16.msra.mxu1 %v5957_v22 }
 0x17b   : > { %5953 = vmatprep.subr.bf16.mxu0 %v6242_v12  ;;  %5959 = vmatprep.subr.bf16.mxu1 %v6242_v12 }
 0x17c   : > { %5564 = vmatprep.mubr.msk.f32.mxu0 %vm6243_vm1, %v6244_v20  ;;  %5575 = vmatprep.mubr.msk.f32.mxu1 %vm6243_vm1, %v6244_v20 }
 0x17e   : > { %5955 = vmatpush3.bf16.msra.mxu0 %v5954_v27  ;;  %5961 = vmatpush3.bf16.msra.mxu1 %v5960_v28 }
 0x17f   : > { %5578 = vmatprep.subr.mxu0 %v6244_v20  ;;  %5593 = vmatprep.subr.mxu1 %v6244_v20 }
 0x181   : > { %5565 = vmatmul.mubr.msk.f32.vlgmr.msra.gmra.mrb[10].mxu0 %vm537_vm0, %v6450_v36  ;;  %5576 = vmatmul.mubr.msk.f32.vlgmr.msra.gmra.mrb[10].mxu1 %vm537_vm0, %v6450_v36 }
 0x182   : > { %5580 = vmatprep.mubr.msk.f32.mxu0 %vm6243_vm1, %v6244_v20  ;;  %5595 = vmatprep.mubr.msk.f32.mxu1 %vm6243_vm1, %v6244_v20 }
 0x22c   : > { %v767_v29 = vpop.f32.mrb[0].mxu0  ;;  %v837_v30 = vpop.f32.mrb[0].mxu1 }
 0x22d   : > { %v5456_v31 = vpop.f32.mrb[1].mxu0  ;;  %v5467_v32 = vpop.f32.mrb[1].mxu1  ;;  %v768_v45 = vadd.f32 %v5063_v40, %v767_v29  ;;  %v838_v50 = vadd.f32 %v5064_v46, %v837_v30 }
 0x234   : > { %v907_v33 = vpop.f32.mrb[2].mxu0  ;;  %v977_v34 = vpop.f32.mrb[2].mxu1 }
 0x235   : > { %v5478_v35 = vpop.f32.mrb[3].mxu0  ;;  %v5489_v37 = vpop.f32.mrb[3].mxu1  ;;  %v908_v59 = vadd.f32 %v5065_v53, %v907_v33  ;;  %v978_v60 = vadd.f32 %v5066_v54, %v977_v34 }
 0x23c   : > { %v1047_v39 = vpop.f32.mrb[4].mxu0  ;;  %v1117_v36 = vpop.f32.mrb[4].mxu1 }
 0x23d   : > { %v1048_v41 = vadd.f32 %v5067_v38, %v1047_v39  ;;  %v5500_v42 = vpop.f32.mrb[5].mxu0  ;;  %v5511_v43 = vpop.f32.mrb[5].mxu1  ;;  %v1118_v47 = vadd.f32 %v5068_v44, %v1117_v36 }
 0x23f   : > { %5579 = vmatpush3.xpose.msk.msra.mxu0 %vm1541_vm2, %v1048_v41 }
 0x240   : > { %5583 = vmatprep.subr.mxu0 %v6244_v20 }
 0x242   : > { %5581 = vmatmul.mubr.msk.f32.vlgmr.msra.gmra.mrb[12].mxu0 %vm1541_vm2, %v768_v45 }
 0x243   : > { %5584 = vmatpush3.xpose.msk.msra.mxu0 %vm1541_vm2, %v1118_v47  ;;  %5585 = vmatprep.mubr.msk.f32.mxu0 %vm6243_vm1, %v6244_v20 }
 0x244   : > { %v1187_v51 = vpop.f32.mrb[6].mxu0  ;;  %v1257_v52 = vpop.f32.mrb[6].mxu1  ;;  %5588 = vmatprep.subr.mxu0 %v6244_v20 }
 0x245   : > { %v1188_v55 = vadd.f32 %v5069_v48, %v1187_v51  ;;  %v1258_v56 = vadd.f32 %v5070_v49, %v1257_v52  ;;  %v5522_v57 = vpop.f32.mrb[7].mxu0  ;;  %v5533_v58 = vpop.f32.mrb[7].mxu1  ;;  %v6694_v49 = vld [vmem:[%s533_s24] sm:$0xff]  ;;  %s6178_s24 = scalar_lea.vmem %s7265_s30, 128 }
 0x246   : > { %5586 = vmatmul.mubr.msk.f32.vlgmr.msra.gmra.mrb[14].mxu0 %vm1541_vm2, %v838_v50  ;;  %p6179_p11 = scmp.ne.s32.totalorder %s7265_s30, %s6178_s24  ;;  %p6186_p1 = scmp.lt.s32.totalorder %s6184_s18, %s6178_s24 }
 0x247   : > { %5589 = vmatpush3.xpose.msk.msra.mxu0 %vm1541_vm2, %v1188_v55  ;;  %5594 = vmatpush3.xpose.msk.msra.mxu1 %vm1541_vm2, %v1258_v56 }
 0x248   : > { %5590 = vmatprep.mubr.msk.f32.mxu0 %vm6243_vm1, %v6244_v20  ;;  %5598 = vmatprep.subr.mxu0 %v6244_v20  ;;  %p6180_p12 = pnand %p6179_p11, %p6369_p5  ;;  %p6187_p2 = por %p6186_p1, %p6185_p0 }
 0x249   : > { %5603 = vmatprep.subr.mxu1 %v6244_v20 }
 0x24a   : > { %5591 = vmatmul.mubr.msk.f32.vlgmr.msra.gmra.mrb[16].mxu0 %vm1541_vm2, %v908_v59  ;;  %5596 = vmatmul.mubr.msk.f32.vlgmr.msra.gmra.mrb[12].mxu1 %vm1541_vm2, %v978_v60  ;;  %p6181_p13 = pneg %p6180_p12 }
 0x24b   : > { %5600 = vmatprep.mubr.msk.f32.mxu0 %vm6243_vm1, %v6244_v20  ;;  %5605 = vmatprep.mubr.msk.f32.mxu1 %vm6243_vm1, %v6244_v20 }
 0x24c   : > { %v1327_v63 = vpop.f32.mrb[8].mxu0  ;;  %v1397_v1 = vpop.f32.mrb[8].mxu1  ;;  %p6188_p3 = pnand %p6187_p2, %p6181_p13 }
 0x24d   : > { %v1328_v2 = vadd.f32 %v5071_v61, %v1327_v63  ;;  %v1398_v3 = vadd.f32 %v5072_v62, %v1397_v1  ;;  %v5544_v4 = vpop.f32.mrb[9].mxu0  ;;  %v5555_v5 = vpop.f32.mrb[9].mxu1 }
 0x24f   : > { %5599 = vmatpush3.msra.mxu0 %v1328_v2  ;;  %5604 = vmatpush3.msra.mxu1 %v1398_v3 }
 0x250   : > { %5608 = vmatprep.subr.mxu0 %v6244_v20  ;;  %5613 = vmatprep.subr.mxu1 %v6244_v20 }
 0x254   : > { %v6677_v6 = vpop.f32.mrb[10].mxu0  ;;  %v6679_v7 = vpop.f32.mrb[10].mxu1 }
 0x255   : > { %v5566_v8 = vpop.f32.mrb[11].mxu0  ;;  %v5577_v9 = vpop.f32.mrb[11].mxu1 }
 0x315   : > { %v1614_v10 = vpop.f32.mrb[12].mxu0 }
 0x316   : > { %v5582_v11 = vpop.f32.mrb[13].mxu0  ;;  %v1846_v13 = vsel %vm1541_vm2, %v1614_v10, -inf }
 0x317   : > { %1847 = vmax.xlane.f32.xlu1 %v1846_v13  ;;  %v5073_v13 = vld [vmem:[%s7309_s3 + $0xa] ss:$0 sm:$0xff] }
 0x319   : > { %v1690_v14 = vpop.f32.mrb[14].mxu0 }
 0x31a   : > { %v5587_v15 = vpop.f32.mrb[15].mxu0  ;;  %v1849_v16 = vsel %vm1541_vm2, %v1690_v14, -inf }
 0x31b   : > { %1850 = vmax.xlane.f32.xlu1 %v1849_v16  ;;  %v1468_v16 = vadd.f32 %v5073_v13, %v6677_v6 }
 0x31d   : > { %v1766_v17 = vpop.f32.mrb[16].mxu0  ;;  %v1842_v18 = vpop.f32.mrb[12].mxu1 }
 0x31e   : > { %v5592_v19 = vpop.f32.mrb[17].mxu0  ;;  %v5597_v21 = vpop.f32.mrb[13].mxu1  ;;  %v1855_v22 = vsel %vm1541_vm2, %v1842_v18, -inf  ;;  %v1852_v23 = vsel %vm1541_vm2, %v1766_v17, -inf }
 0x31f   : > { %1856 = vmax.xlane.f32.xlu1 %v1855_v22  ;;  %1853 = vmax.xlane.f32.xlu0 %v1852_v23 }
 0x3a4   : > { %v1848_v24 = vpop.xlane.xlu1 %1847 }
 0x3a5   : > { %v1858_v25 = vsub.f32 %v1614_v10, %v1848_v24 }
 0x3a7   : > { %v1862_v26 = vmul.f32 1.442695, %v1858_v25  ;;  %v2212_v25 = vld [vmem:[%s7310_s4 + $0x8] sm:$0xff] }
 0x3a8   : > { %v1851_v27 = vpop.xlane.xlu1 %1850 }
 0x3a9   : > { %6114 = vpow2.f32 %v1862_v26  ;;  %v1859_v28 = vsub.f32 %v1690_v14, %v1851_v27  ;;  %v2213_v26 = vld [vmem:[%s7310_s4 + $0x10] sm:$0xff] }
 0x3ab   : > { %v1864_v29 = vmul.f32 1.442695, %v1859_v28 }
 0x3ac   : > { %v1857_v30 = vpop.xlane.xlu1 %1856  ;;  %v1854_v31 = vpop.xlane.xlu0 %1853 }
 0x3ad   : > { %6116 = vpow2.f32 %v1864_v29  ;;  %v1861_v32 = vsub.f32 %v1842_v18, %v1857_v30  ;;  %v1860_v33 = vsub.f32 %v1766_v17, %v1854_v31  ;;  %v5074_v17 = vld [vmem:[%s7309_s3 + $0xb] ss:$0 sm:$0xff]  ;;  %v2214_v29 = vld [vmem:[%s7310_s4 + $0x18] sm:$0xff] }
 0x3ae   : > { %v1538_v21 = vadd.f32 %v5074_v17, %v6679_v7  ;;  %v2211_v7 = vld [vmem:[%s7310_s4] sm:$0xff] }
 0x3af   : > { %v1868_v34 = vmul.f32 1.442695, %v1861_v32  ;;  %v1866_v35 = vmul.f32 1.442695, %v1860_v33 }
 0x3b1   : > { %6118 = vpow2.f32 %v1868_v34 }
 0x3b2   : > { %6120 = vpow2.f32 %v1866_v35 }
 0x3b3   : > { %v6115_v37 = vpop.eup %6114 }
 0x3b4   : > { %v1870_v38 = vsel %vm1541_vm2, %v6115_v37, 0.0 }
 0x3b5   : > { %1871 = vadd.xlane.f32.xlu0 %v1870_v38 }
 0x3b7   : > { %v6117_v39 = vpop.eup %6116 }
 0x3b8   : > { %v1873_v36 = vsel %vm1541_vm2, %v6117_v39, 0.0 }
 0x3b9   : > { %1874 = vadd.xlane.f32.xlu1 %v1873_v36 }
 0x3bb   : > { %v6119_v40 = vpop.eup %6118 }
 0x3bc   : > { %v6121_v41 = vpop.eup %6120  ;;  %v1879_v42 = vsel %vm1541_vm2, %v6119_v40, 0.0 }
 0x3bd   : > { %1880 = vadd.xlane.f32.xlu1 %v1879_v42  ;;  %v1876_v43 = vsel %vm1541_vm2, %v6121_v41, 0.0 }
 0x3be   : > { %1877 = vadd.xlane.f32.xlu0 %v1876_v43 }
 0x442   : > { %v1872_v44 = vpop.xlane.xlu0 %1871 }
 0x443   : > { %6122 = vrcp.f32 %v1872_v44 }
 0x446   : > { %v1875_v45 = vpop.xlane.xlu1 %1874 }
 0x447   : > { %6124 = vrcp.f32 %v1875_v45 }
 0x44a   : > { %v1881_v46 = vpop.xlane.xlu1 %1880 }
 0x44b   : > { %6126 = vrcp.f32 %v1881_v46  ;;  %v1878_v47 = vpop.xlane.xlu0 %1877 }
 0x44c   : > { %6128 = vrcp.f32 %v1878_v47 }
 0x44d   : > { %v6123_v48 = vpop.eup %6122 }
 0x44e   : > { %v1883_v50 = vmul.f32 %v6123_v48, %v6115_v37 }
 0x450   : > { %v1891_v51 = vmul.f32 %v6694_v49, %v1883_v50 }
 0x451   : > { %v6125_v52 = vpop.eup %6124 }
 0x452   : > { %v1895_v53 = vsel %vm1541_vm2, %v1891_v51, 0.0  ;;  %v1885_v54 = vmul.f32 %v6125_v52, %v6117_v39 }
 0x453   : > { %1896 = vadd.xlane.f32.xlu0 %v1895_v53 }
 0x454   : > { %v1892_v55 = vmul.f32 %v6694_v49, %v1885_v54 }
 0x455   : > { %v6127_v56 = vpop.eup %6126 }
 0x456   : > { %v6129_v57 = vpop.eup %6128  ;;  %v1898_v58 = vsel %vm1541_vm2, %v1892_v55, 0.0  ;;  %v1889_v59 = vmul.f32 %v6127_v56, %v6119_v40 }
 0x457   : > { %1899 = vadd.xlane.f32.xlu1 %v1898_v58  ;;  %v1887_v60 = vmul.f32 %v6129_v57, %v6121_v41 }
 0x458   : > { %v1894_v61 = vmul.f32 %v6694_v49, %v1889_v59 }
 0x459   : > { %v1893_v62 = vmul.f32 %v6694_v49, %v1887_v60 }
 0x45a   : > { %v1904_v63 = vsel %vm1541_vm2, %v1894_v61, 0.0 }
 0x45b   : > { %1905 = vadd.xlane.f32.xlu1 %v1904_v63  ;;  %v1901_v1 = vsel %vm1541_vm2, %v1893_v62, 0.0  ;;  %v2554_v63 = vld [vmem:[%s7316_s10 + $0x10] sm:$0xff] }
 0x45c   : > { %1902 = vadd.xlane.f32.xlu0 %v1901_v1  ;;  %v2555_v1 = vld [vmem:[%s7316_s10 + $0x18] sm:$0xff] }
 0x4e0   : > { %v1897_v2 = vpop.xlane.xlu0 %1896 }
 0x4e1   : > { %v1907_v3 = vadd.f32 1e-15, %v1897_v2  ;;  %v5966_v2 = vpack.c.bf16 %v2555_v1, %v2554_v63  ;;  %v5119_v63 = vld [vmem:[%s7308_s2 + $0x1a0] sm:$0xff] }
 0x4e3   : > { %6130 = vrcp.f32 %v1907_v3 }
 0x4e4   : > { %v1900_v4 = vpop.xlane.xlu1 %1899 }
 0x4e5   : > { %v1908_v5 = vadd.f32 1e-15, %v1900_v4 }
 0x4e7   : > { %6132 = vrcp.f32 %v1908_v5 }
 0x4e8   : > { %v1906_v8 = vpop.xlane.xlu1 %1905 }
 0x4e9   : > { %v1910_v9 = vadd.f32 1e-15, %v1906_v8  ;;  %v1903_v10 = vpop.xlane.xlu0 %1902 }
 0x4ea   : > { %v1909_v11 = vadd.f32 1e-15, %v1903_v10 }
 0x4eb   : > { %6134 = vrcp.f32 %v1910_v9  ;;  %v5104_v9 = vld [vmem:[%s7314_s8] ss:$0 sm:$0xff] }
 0x4ec   : > { %6136 = vrcp.f32 %v1909_v11  ;;  %v5105_v11 = vld [vmem:[%s7315_s9] ss:$0 sm:$0xff] }
 0x4ed   : > { %v6131_v14 = vpop.eup %6130 }
 0x4ee   : > { %v1912_v15 = vmul.f32 %v6131_v14, %v1891_v51  ;;  %v5103_v51 = vld [vmem:[%s7311_s5] ss:$0 sm:$0xff] }
 0x4f0   : > { %5601 = vmatmul.mubr.msk.f32.vlgmr.msra.gmra.mrb[18].mxu0 %vm1541_vm2, %v1912_v15  ;;  %v2643_v15 = vld [vmem:[%s7318_s12] sm:$0xff] }
 0x4f1   : > { %v6133_v18 = vpop.eup %6132  ;;  %5609 = vmatpush3.msra.mxu0 %v1468_v16  ;;  %5610 = vmatprep.mubr.msk.f32.mxu0 %vm6243_vm1, %v6244_v20  ;;  %v2644_v16 = vld [vmem:[%s7318_s12 + $0x8] sm:$0xff] }
 0x4f2   : > { %v1914_v19 = vmul.f32 %v6133_v18, %v1892_v55  ;;  %5618 = vmatprep.subr.mxu0 %v6244_v20  ;;  %v5969_v17 = vpack.c.bf16 %v2644_v16, %v2643_v15  ;;  %v2645_v18 = vld [vmem:[%s7318_s12 + $0x10] sm:$0xff]  ;;  %v5134_v16 = vld [vmem:[%s7308_s2 + $0x218] sm:$0xff] }
 0x4f3   : > { %v5133_v15 = vld [vmem:[%s7308_s2 + $0x210] sm:$0xff] }
 0x4f4   : > { %5606 = vmatmul.mubr.msk.f32.vlgmr.msra.gmra.mrb[14].mxu1 %vm1541_vm2, %v1914_v19  ;;  %v2646_v19 = vld [vmem:[%s7318_s12 + $0x18] sm:$0xff] }
 0x4f5   : > { %v6135_v22 = vpop.eup %6134  ;;  %5614 = vmatpush3.msra.mxu1 %v1538_v21  ;;  %5615 = vmatprep.mubr.msk.f32.mxu1 %vm6243_vm1, %v6244_v20  ;;  %v5972_v21 = vpack.c.bf16 %v2646_v19, %v2645_v18  ;;  %v6008_v18 = vpack.c.bf16 %v5134_v16, %v5133_v15  ;;  %v5127_v19 = vld [vmem:[%s7308_s2 + $0x1e0] sm:$0xff]  ;;  %v5175_v15 = vld [vmem:[%s7309_s3 + $0xc] ss:$0 sm:$0xff] }
 0x4f6   : > { %v6137_v6 = vpop.eup %6136  ;;  %v1918_v23 = vmul.f32 %v6135_v22, %v1894_v61  ;;  %5623 = vmatprep.subr.mxu1 %v6244_v20  ;;  %v2552_v61 = vld [vmem:[%s7316_s10] sm:$0xff] }
 0x4f7   : > { %v1916_v24 = vmul.f32 %v6137_v6, %v1893_v62  ;;  %v2647_v22 = vld [vmem:[%s7318_s12 + $0x20] sm:$0xff]  ;;  %v2648_v6 = vld [vmem:[%s7318_s12 + $0x28] sm:$0xff] }
 0x4f8   : > { %5616 = vmatmul.mubr.msk.f32.vlgmr.msra.gmra.mrb[16].mxu1 %vm1541_vm2, %v1918_v23  ;;  %v5975_v23 = vpack.c.bf16 %v2648_v6, %v2647_v22  ;;  %v5139_v22 = vld [vmem:[%s7308_s2 + $0x240] sm:$0xff]  ;;  %v5140_v6 = vld [vmem:[%s7308_s2 + $0x248] sm:$0xff] }
 0x4f9   : > { %5611 = vmatmul.mubr.msk.f32.vlgmr.msra.gmra.mrb[20].mxu0 %vm1541_vm2, %v1916_v24  ;;  %5625 = vmatprep.mubr.msk.f32.mxu1 %vm6243_vm1, %v6244_v20  ;;  %v2649_v24 = vld [vmem:[%s7318_s12 + $0x30] sm:$0xff] }
 0x4fa   : > { %5620 = vmatprep.mubr.msk.f32.mxu0 %vm6243_vm1, %v6244_v20  ;;  %5619 = vmatpush3.msra.mxu0 %v2211_v7  ;;  %v2650_v7 = vld [vmem:[%s7318_s12 + $0x38] sm:$0xff] }
 0x4fb   : > { %5628 = vmatprep.subr.mxu0 %v6244_v20  ;;  %5624 = vmatpush3.msra.mxu1 %v2212_v25  ;;  %v5978_v25 = vpack.c.bf16 %v2650_v7, %v2649_v24  ;;  %v6017_v24 = vpack.c.bf16 %v5140_v6, %v5139_v22  ;;  %v5129_v7 = vld [vmem:[%s7308_s2 + $0x1f0] sm:$0xff]  ;;  %v5177_v6 = vld [vmem:[%s7309_s3 + $0xe] ss:$0 sm:$0xff] }
 0x4fc   : > { %5633 = vmatprep.subr.mxu1 %v6244_v20 }
 0x5c3   : > { %v1988_v27 = vpop.f32.mrb[18].mxu0 }
 0x5c4   : > { %v5602_v28 = vpop.f32.mrb[19].mxu0  ;;  %5621 = vmatmul.mubr.msk.f32.vlgmr.msra.gmra.mrb[22].mxu0 %vm1541_vm2, %v1988_v27 }
 0x5c5   : > { %5629 = vmatpush3.msra.mxu0 %v2213_v26  ;;  %5630 = vmatprep.mubr.msk.f32.mxu0 %vm6243_vm1, %v6244_v20  ;;  %v5106_v26 = vld [vmem:[%s7317_s11] ss:$0 sm:$0xff] }
 0x5c6   : > { %5962 = vmatprep.subr.bf16.mxu0 %v6242_v12 }
 0x5c7   : > { %v2061_v30 = vpop.f32.mrb[14].mxu1 }
 0x5c8   : > { %v5607_v31 = vpop.f32.mrb[15].mxu1  ;;  %5626 = vmatmul.mubr.msk.f32.vlgmr.msra.gmra.mrb[18].mxu1 %vm1541_vm2, %v2061_v30 }
 0x5c9   : > { %5634 = vmatpush3.msra.mxu1 %v2214_v29  ;;  %5635 = vmatprep.mubr.msk.f32.mxu1 %vm6243_vm1, %v6244_v20 }
 0x5ca   : > { %5968 = vmatprep.subr.bf16.mxu1 %v6242_v12 }
 0x5cb   : > { %v2207_v32 = vpop.f32.mrb[16].mxu1 }
 0x5cc   : > { %v2134_v33 = vpop.f32.mrb[20].mxu0  ;;  %v5617_v34 = vpop.f32.mrb[17].mxu1  ;;  %5636 = vmatmul.mubr.msk.f32.vlgmr.msra.gmra.mrb[20].mxu1 %vm1541_vm2, %v2207_v32 }
 0x5cd   : > { %v5612_v35 = vpop.f32.mrb[21].mxu0  ;;  %5631 = vmatmul.mubr.msk.f32.vlgmr.msra.gmra.mrb[24].mxu0 %vm1541_vm2, %v2134_v33  ;;  %5665 = vmatprep.mubr.msk.f32.mxu1 %vm6243_vm1, %v6244_v20 }
 0x5ce   : > { %5646 = vmatprep.mubr.msk.f32.mxu0 %vm6243_vm1, %v6244_v20  ;;  %5970 = vmatpush3.bf16.msra.mxu1 %v5969_v17  ;;  %v5109_v35 = vld [vmem:[%s7319_s13] ss:$0 sm:$0xff] }
 0x5cf   : > { %5971 = vmatprep.subr.bf16.mxu1 %v6242_v12 }
 0x5d2   : > { %5973 = vmatpush3.bf16.msra.mxu1 %v5972_v21  ;;  %v5128_v21 = vld [vmem:[%s7308_s2 + $0x1e8] sm:$0xff] }
 0x5d3   : > { %5974 = vmatprep.subr.bf16.mxu1 %v6242_v12 }
 0x5d6   : > { %5976 = vmatpush3.bf16.msra.mxu1 %v5975_v23  ;;  %v5999_v23 = vpack.c.bf16 %v5128_v21, %v5127_v19  ;;  %v5181_v19 = vld [vmem:[%s7309_s3 + $0x12] ss:$0 sm:$0xff] }
 0x5d7   : > { %5977 = vmatprep.subr.bf16.mxu1 %v6242_v12 }
 0x5da   : > { %5979 = vmatpush3.bf16.msra.mxu1 %v5978_v25  ;;  %v5130_v25 = vld [vmem:[%s7308_s2 + $0x1f8] sm:$0xff] }
 0x5db   : > { %5992 = vmatprep.subr.bf16.mxu1 %v6242_v12 }
 0x697   : > { %v2284_v37 = vpop.f32.mrb[22].mxu0 }
 0x698   : > { %v5622_v38 = vpop.f32.mrb[23].mxu0  ;;  %v2507_v36 = vsel %vm537_vm0, %v2284_v37, 0.0 }
 0x69b   : > { %v2357_v39 = vpop.f32.mrb[18].mxu1 }
 0x69c   : > { %v2508_v40 = vsel %vm537_vm0, %v2357_v39, 0.0  ;;  %v5627_v41 = vpop.f32.mrb[19].mxu1 }
 0x69d   : > { %v2509_v42 = vadd.f32 %v2508_v40, %v2507_v36 }
 0x69f   : > { %v2503_v43 = vpop.f32.mrb[20].mxu1 }
 0x6a0   : > { %v2430_v44 = vpop.f32.mrb[24].mxu0  ;;  %v5637_v45 = vpop.f32.mrb[21].mxu1  ;;  %v2512_v50 = vsel %vm537_vm0, %v2503_v43, 0.0 }
 0x6a1   : > { %v2510_v46 = vsel %vm537_vm0, %v2430_v44, 0.0  ;;  %v5632_v47 = vpop.f32.mrb[25].mxu0 }
 0x6a2   : > { %v2511_v48 = vadd.f32 %v2510_v46, %v2509_v42  ;;  %v5115_v46 = vld [vmem:[%s7308_s2 + $0x180] sm:$0xff]  ;;  %v5116_v47 = vld [vmem:[%s7308_s2 + $0x188] sm:$0xff] }
 0x6a4   : > { %v2513_v52 = vadd.f32 %v2512_v50, %v2511_v48  ;;  %v5123_v48 = vld [vmem:[%s7308_s2 + $0x1c0] sm:$0xff]  ;;  %v5981_v50 = vpack.c.bf16 %v5116_v47, %v5115_v46  ;;  %v5156_v46 = vld [vmem:[%s7308_s2 + $0x2c8] sm:$0xff] }
 0x6a6   : > { %v2521_v53 = vadd.f32 %v5103_v51, %v2513_v52  ;;  %v5124_v51 = vld [vmem:[%s7308_s2 + $0x1c8] sm:$0xff] }
 0x6a7   : > { %v5993_v52 = vpack.c.bf16 %v5124_v51, %v5123_v48  ;;  %v5146_v51 = vld [vmem:[%s7308_s2 + $0x278] sm:$0xff] }
 0x6a8   : > { %v6762_v54 = vadd.f32 %v2521_v53, %v6389_v0  ;;  %v2553_v0 = vld [vmem:[%s7316_s10 + $0x8] sm:$0xff]  ;;  %v5117_v53 = vld [vmem:[%s7308_s2 + $0x190] sm:$0xff] }
 0x6a9   : > { %v5963_v62 = vpack.c.bf16 %v2553_v0, %v2552_v61 }
 0x6aa   : > { %v2525_v55 = vsel %vm537_vm0, %v6762_v54, 0.0 }
 0x6ab   : > { %2526 = vadd.xlane.f32.xlu0 %v2525_v55  ;;  %5964 = vmatpush3.bf16.msra.mxu0 %v5963_v62  ;;  %v5125_v55 = vld [vmem:[%s7308_s2 + $0x1d0] sm:$0xff]  ;;  %v5113_v62 = vld [vmem:[%s7312_s6 + $0x1] ss:$0 sm:$0xff] }
 0x6ac   : > { %5965 = vmatprep.subr.bf16.mxu0 %v6242_v12 }
 0x6af   : > { %5967 = vmatpush3.bf16.msra.mxu0 %v5966_v2  ;;  %v5120_v2 = vld [vmem:[%s7308_s2 + $0x1a8] sm:$0xff] }
 0x6b0   : > { %5980 = vmatprep.subr.bf16.mxu0 %v6242_v12 }
 0x738   : > { %v2527_v56 = vpop.xlane.xlu0 %2526 }
 0x739   : > { %v2528_v57 = vmul.f32 0.03125, %v2527_v56 }
 0x73b   : > { %v2529_v58 = vsub.f32 %v6762_v54, %v2528_v57  ;;  %v5126_v57 = vld [vmem:[%s7308_s2 + $0x1d8] sm:$0xff] }
 0x73d   : > { %v2530_v59 = vmul.f32 %v2529_v58, %v2529_v58 }
 0x73f   : > { %v2531_v60 = vsel %vm537_vm0, %v2530_v59, 0.0 }
 0x740   : > { %2532 = vadd.xlane.f32.xlu1 %v2531_v60 }
 0x7cd   : > { %v2533_v3 = vpop.xlane.xlu1 %2532 }
 0x7ce   : > { %v2534_v4 = vmul.f32 0.03125, %v2533_v3  ;;  %v5131_v3 = vld [vmem:[%s7308_s2 + $0x200] sm:$0xff] }
 0x7d0   : > { %v2535_v5 = vadd.f32 1e-05, %v2534_v4  ;;  %v5132_v4 = vld [vmem:[%s7308_s2 + $0x208] sm:$0xff] }
 0x7d2   : > { %6138 = vrsqrt.f32 %v2535_v5  ;;  %v5114_v5 = vld [vmem:[%s7313_s7 + $0x1] ss:$0 sm:$0xff] }
 0x7dc   : > { %v6139_v8 = vpop.eup %6138 }
 0x7dd   : > { %v2537_v10 = vmul.f32 %v6139_v8, %v2529_v58  ;;  %v5996_v58 = vpack.c.bf16 %v5126_v57, %v5125_v55  ;;  %v5152_v57 = vld [vmem:[%s7308_s2 + $0x2a8] sm:$0xff] }
 0x7df   : > { %v2544_v13 = vmul.f32 %v5104_v9, %v2537_v10  ;;  %v5987_v9 = vpack.c.bf16 %v5120_v2, %v5119_v63  ;;  %v6005_v10 = vpack.c.bf16 %v5132_v4, %v5131_v3  ;;  %v5162_v2 = vld [vmem:[%s7308_s2 + $0x2f8] sm:$0xff] }
 0x7e1   : > { %v2551_v14 = vadd.f32 %v5105_v11, %v2544_v13  ;;  %v5121_v11 = vld [vmem:[%s7308_s2 + $0x1b0] sm:$0xff] }
 0x7e3   : > { %5647 = vmatmul.mubr.msk.f32.vlgmr.msra.gmra.mrb[26].mxu0 %vm537_vm0, %v2551_v14  ;;  %v5122_v14 = vld [vmem:[%s7308_s2 + $0x1b8] sm:$0xff] }
 0x7e4   : > { %5676 = vmatprep.mubr.msk.f32.mxu0 %vm6243_vm1, %v6244_v20  ;;  %5982 = vmatpush3.bf16.msra.mxu0 %v5981_v50  ;;  %v5990_v17 = vpack.c.bf16 %v5122_v14, %v5121_v11  ;;  %v5145_v50 = vld [vmem:[%s7308_s2 + $0x270] sm:$0xff] }
 0x7e5   : > { %5983 = vmatprep.subr.bf16.mxu0 %v6242_v12 }
 0x8b6   : > { %v2632_v27 = vpop.f32.mrb[26].mxu0 }
 0x8b7   : > { %v2633_v28 = vadd.f32 %v5106_v26, %v2632_v27  ;;  %v5648_v29 = vpop.f32.mrb[27].mxu0  ;;  %v5141_v26 = vld [vmem:[%s7308_s2 + $0x250] sm:$0xff]  ;;  %v5142_v27 = vld [vmem:[%s7308_s2 + $0x258] sm:$0xff] }
 0x8b8   : > { %v6020_v29 = vpack.c.bf16 %v5142_v27, %v5141_v26  ;;  %v5180_v26 = vld [vmem:[%s7309_s3 + $0x11] ss:$0 sm:$0xff]  ;;  %v5183_v27 = vld [vmem:[%s7309_s3 + $0x14] ss:$0 sm:$0xff] }
 0x8b9   : > { %v5108_v30 = vmul.f32 -1.442695, %v2633_v28 }
 0x8bb   : > { %6140 = vpow2.f32 %v5108_v30  ;;  %v5135_v30 = vld [vmem:[%s7308_s2 + $0x220] sm:$0xff] }
 0x8c5   : > { %v6141_v31 = vpop.eup %6140 }
 0x8c6   : > { %v2639_v32 = vadd.f32 1.0, %v6141_v31  ;;  %v5136_v31 = vld [vmem:[%s7308_s2 + $0x228] sm:$0xff] }
 0x8c8   : > { %6142 = vrcp.f32 %v2639_v32  ;;  %v5147_v32 = vld [vmem:[%s7308_s2 + $0x280] sm:$0xff] }
 0x8d2   : > { %v6143_v33 = vpop.eup %6142 }
 0x8d3   : > { %v2642_v34 = vmul.f32 %v6143_v33, %v2633_v28  ;;  %v6002_v28 = vpack.c.bf16 %v5130_v25, %v5129_v7  ;;  %v5148_v33 = vld [vmem:[%s7308_s2 + $0x288] sm:$0xff] }
 0x8d5   : > { %5666 = vmatmul.mubr.msk.f32.vlgmr.msra.gmra.mrb[22].mxu1 %vm2658_vm3, %v2642_v34  ;;  %v6011_v34 = vpack.c.bf16 %v5136_v31, %v5135_v30  ;;  %v5176_v30 = vld [vmem:[%s7309_s3 + $0xd] ss:$0 sm:$0xff] }
 0x8d6   : > { %5698 = vmatprep.mubr.msk.f32.mxu1 %vm6243_vm1, %v6244_v20  ;;  %5994 = vmatpush3.bf16.msra.mxu1 %v5993_v52  ;;  %v5157_v52 = vld [vmem:[%s7308_s2 + $0x2d0] sm:$0xff] }
 0x8d7   : > { %5995 = vmatprep.subr.bf16.mxu1 %v6242_v12 }
 0x8da   : > { %5997 = vmatpush3.bf16.msra.mxu1 %v5996_v58 }
 0x8db   : > { %6004 = vmatprep.subr.bf16.mxu1 %v6242_v12 }
 0x9a8   : > { %v2728_v37 = vpop.f32.mrb[22].mxu1 }
 0x9a9   : > { %v2729_v38 = vadd.f32 %v5109_v35, %v2728_v37  ;;  %v5667_v39 = vpop.f32.mrb[23].mxu1  ;;  %v6029_v35 = vpack.c.bf16 %v5148_v33, %v5147_v32  ;;  %v5137_v37 = vld [vmem:[%s7308_s2 + $0x230] sm:$0xff] }
 0x9aa   : > { %v5149_v39 = vld [vmem:[%s7308_s2 + $0x290] sm:$0xff] }
 0x9ab   : > { %v6829_v36 = vadd.f32 %v2729_v38, %v6762_v54  ;;  %v5118_v54 = vld [vmem:[%s7308_s2 + $0x198] sm:$0xff] }
 0x9ac   : > { %v5984_v56 = vpack.c.bf16 %v5118_v54, %v5117_v53  ;;  %v5138_v38 = vld [vmem:[%s7308_s2 + $0x238] sm:$0xff]  ;;  %v6026_v54 = vpack.c.bf16 %v5146_v51, %v5145_v50 }
 0x9ad   : > { %v2737_v40 = vsel %vm537_vm0, %v6829_v36, 0.0  ;;  %v5158_v53 = vld [vmem:[%s7308_s2 + $0x2d8] sm:$0xff] }
 0x9ae   : > { %2738 = vadd.xlane.f32.xlu0 %v2737_v40  ;;  %5985 = vmatpush3.bf16.msra.mxu0 %v5984_v56  ;;  %v5150_v40 = vld [vmem:[%s7308_s2 + $0x298] sm:$0xff]  ;;  %v6044_v55 = vpack.c.bf16 %v5158_v53, %v5157_v52  ;;  %v5151_v56 = vld [vmem:[%s7308_s2 + $0x2a0] sm:$0xff] }
 0x9af   : > { %5986 = vmatprep.subr.bf16.mxu0 %v6242_v12  ;;  %v6035_v58 = vpack.c.bf16 %v5152_v57, %v5151_v56 }
 0xa3b   : > { %v2739_v41 = vpop.xlane.xlu0 %2738 }
 0xa3c   : > { %v2740_v42 = vmul.f32 0.03125, %v2739_v41  ;;  %v6014_v41 = vpack.c.bf16 %v5138_v38, %v5137_v37  ;;  %v5182_v37 = vld [vmem:[%s7309_s3 + $0x13] ss:$0 sm:$0xff] }
 0xa3e   : > { %v2741_v43 = vsub.f32 %v6829_v36, %v2740_v42  ;;  %v6032_v42 = vpack.c.bf16 %v5150_v40, %v5149_v39  ;;  %v5178_v40 = vld [vmem:[%s7309_s3 + $0xf] ss:$0 sm:$0xff] }
 0xa40   : > { %v2742_v44 = vmul.f32 %v2741_v43, %v2741_v43 }
 0xa42   : > { %v2743_v45 = vsel %vm537_vm0, %v2742_v44, 0.0  ;;  %v5144_v44 = vld [vmem:[%s7308_s2 + $0x268] sm:$0xff] }
 0xa43   : > { %2744 = vadd.xlane.f32.xlu1 %v2743_v45  ;;  %v5155_v45 = vld [vmem:[%s7308_s2 + $0x2c0] sm:$0xff] }
 0xa44   : > { %v6041_v48 = vpack.c.bf16 %v5156_v46, %v5155_v45  ;;  %v5184_v45 = vld [vmem:[%s7309_s3 + $0x15] ss:$0 sm:$0xff] }
 0xad0   : > { %v2745_v59 = vpop.xlane.xlu1 %2744 }
 0xad1   : > { %v2746_v60 = vmul.f32 0.03125, %v2745_v59  ;;  %v5153_v59 = vld [vmem:[%s7308_s2 + $0x2b0] sm:$0xff] }
 0xad3   : > { %v2747_v61 = vadd.f32 1e-05, %v2746_v60  ;;  %v5154_v60 = vld [vmem:[%s7308_s2 + $0x2b8] sm:$0xff] }
 0xad5   : > { %6144 = vrsqrt.f32 %v2747_v61  ;;  %v6038_v61 = vpack.c.bf16 %v5154_v60, %v5153_v59 }
 0xadf   : > { %v6145_v0 = vpop.eup %6144 }
 0xae0   : > { %v2749_v1 = vmul.f32 %v6145_v0, %v2741_v43  ;;  %v5143_v43 = vld [vmem:[%s7308_s2 + $0x260] sm:$0xff] }
 0xae1   : > { %v6023_v47 = vpack.c.bf16 %v5144_v44, %v5143_v43  ;;  %v5159_v0 = vld [vmem:[%s7308_s2 + $0x2e0] sm:$0xff] }
 0xae2   : > { %v2756_v8 = vmul.f32 %v5113_v62, %v2749_v1  ;;  %v5160_v62 = vld [vmem:[%s7308_s2 + $0x2e8] sm:$0xff]  ;;  %v5161_v1 = vld [vmem:[%s7308_s2 + $0x2f0] sm:$0xff] }
 0xae3   : > { %v6047_v63 = vpack.c.bf16 %v5160_v62, %v5159_v0  ;;  %v6050_v3 = vpack.c.bf16 %v5162_v2, %v5161_v1 }
 0xae4   : > { %v6884_v13 = vadd.f32 %v5114_v5, %v2756_v8 }
 0xae6   : > { %5677 = vmatmul.mubr.msk.f32.vlgmr.msra.gmra.mrb[28].mxu0 %vm537_vm0, %v6884_v13  ;;  %5699 = vmatmul.mubr.msk.f32.vlgmr.msra.gmra.mrb[24].mxu1 %vm537_vm0, %v6884_v13 }
 0xae7   : > { %5988 = vmatpush3.bf16.msra.mxu0 %v5987_v9  ;;  %6006 = vmatpush3.bf16.msra.mxu1 %v6005_v10  ;;  %v5179_v10 = vld [vmem:[%s7309_s3 + $0x10] ss:$0 sm:$0xff] }
 0xae8   : > { %5989 = vmatprep.subr.bf16.mxu0 %v6242_v12  ;;  %6007 = vmatprep.subr.bf16.mxu1 %v6242_v12 }
 0xae9   : > { %5687 = vmatprep.mubr.msk.f32.mxu0 %vm6243_vm1, %v6244_v20  ;;  %5720 = vmatprep.mubr.msk.f32.mxu1 %vm6243_vm1, %v6244_v20 }
 0xaeb   : > { %5991 = vmatpush3.bf16.msra.mxu0 %v5990_v17  ;;  %6009 = vmatpush3.bf16.msra.mxu1 %v6008_v18 }
 0xaec   : > { %5998 = vmatprep.subr.bf16.mxu0 %v6242_v12  ;;  %6016 = vmatprep.subr.bf16.mxu1 %v6242_v12 }
 0xaee   : > { %5688 = vmatmul.mubr.msk.f32.vlgmr.msra.gmra.mrb[30].mxu0 %vm537_vm0, %v6884_v13  ;;  %5721 = vmatmul.mubr.msk.f32.vlgmr.msra.gmra.mrb[26].mxu1 %vm537_vm0, %v6884_v13 }
 0xaef   : > { %6000 = vmatpush3.bf16.msra.mxu0 %v5999_v23  ;;  %6018 = vmatpush3.bf16.msra.mxu1 %v6017_v24 }
 0xaf0   : > { %6001 = vmatprep.subr.bf16.mxu0 %v6242_v12  ;;  %6019 = vmatprep.subr.bf16.mxu1 %v6242_v12 }
 0xaf1   : > { %5709 = vmatprep.mubr.msk.f32.mxu0 %vm6243_vm1, %v6244_v20  ;;  %5742 = vmatprep.mubr.msk.f32.mxu1 %vm6243_vm1, %v6244_v20 }
 0xaf3   : > { %6003 = vmatpush3.bf16.msra.mxu0 %v6002_v28  ;;  %6021 = vmatpush3.bf16.msra.mxu1 %v6020_v29 }
 0xaf4   : > { %6010 = vmatprep.subr.bf16.mxu0 %v6242_v12  ;;  %6028 = vmatprep.subr.bf16.mxu1 %v6242_v12 }
 0xaf6   : > { %5710 = vmatmul.mubr.msk.f32.vlgmr.msra.gmra.mrb[32].mxu0 %vm537_vm0, %v6884_v13  ;;  %5743 = vmatmul.mubr.msk.f32.vlgmr.msra.gmra.mrb[28].mxu1 %vm537_vm0, %v6884_v13 }
 0xaf7   : > { %6012 = vmatpush3.bf16.msra.mxu0 %v6011_v34  ;;  %6030 = vmatpush3.bf16.msra.mxu1 %v6029_v35 }
 0xaf8   : > { %6013 = vmatprep.subr.bf16.mxu0 %v6242_v12  ;;  %6031 = vmatprep.subr.bf16.mxu1 %v6242_v12 }
 0xaf9   : > { %5731 = vmatprep.mubr.msk.f32.mxu0 %vm6243_vm1, %v6244_v20  ;;  %5764 = vmatprep.mubr.msk.f32.mxu1 %vm6243_vm1, %v6244_v20 }
 0xafb   : > { %6015 = vmatpush3.bf16.msra.mxu0 %v6014_v41  ;;  %6033 = vmatpush3.bf16.msra.mxu1 %v6032_v42 }
 0xafc   : > { %6022 = vmatprep.subr.bf16.mxu0 %v6242_v12  ;;  %6040 = vmatprep.subr.bf16.mxu1 %v6242_v12 }
 0xafe   : > { %5732 = vmatmul.mubr.msk.f32.vlgmr.msra.gmra.mrb[34].mxu0 %vm537_vm0, %v6884_v13  ;;  %5765 = vmatmul.mubr.msk.f32.vlgmr.msra.gmra.mrb[30].mxu1 %vm537_vm0, %v6884_v13 }
 0xaff   : > { %6024 = vmatpush3.bf16.msra.mxu0 %v6023_v47  ;;  %6042 = vmatpush3.bf16.msra.mxu1 %v6041_v48 }
 0xb00   : > { %6025 = vmatprep.subr.bf16.mxu0 %v6242_v12  ;;  %6043 = vmatprep.subr.bf16.mxu1 %v6242_v12 }
 0xb01   : > { %5753 = vmatprep.mubr.msk.f32.mxu0 %vm6243_vm1, %v6244_v20  ;;  %5786 = vmatprep.mubr.msk.f32.mxu1 %vm6243_vm1, %v6244_v20 }
 0xb03   : > { %6027 = vmatpush3.bf16.msra.mxu0 %v6026_v54  ;;  %6045 = vmatpush3.bf16.msra.mxu1 %v6044_v55 }
 0xb04   : > { %6034 = vmatprep.subr.bf16.mxu0 %v6242_v12  ;;  %5800 = vmatprep.subr.mxu1 %v6244_v20 }
 0xb06   : > { %5754 = vmatmul.mubr.msk.f32.vlgmr.msra.gmra.mrb[36].mxu0 %vm537_vm0, %v6884_v13  ;;  %5787 = vmatmul.mubr.msk.f32.vlgmr.msra.gmra.mrb[32].mxu1 %vm537_vm0, %v6884_v13 }
 0xb07   : > { %6036 = vmatpush3.bf16.msra.mxu0 %v6035_v58  ;;  %5775 = vmatprep.mubr.msk.f32.mxu0 %vm6243_vm1, %v6244_v20 }
 0xb08   : > { %6037 = vmatprep.subr.bf16.mxu0 %v6242_v12  ;;  %5802 = vmatprep.mubr.msk.f32.mxu1 %vm6243_vm1, %v6244_v20 }
 0xb0b   : > { %6039 = vmatpush3.bf16.msra.mxu0 %v6038_v61 }
 0xb0c   : > { %6046 = vmatprep.subr.bf16.mxu0 %v6242_v12 }
 0xb0e   : > { %5776 = vmatmul.mubr.msk.f32.vlgmr.msra.gmra.mrb[38].mxu0 %vm537_vm0, %v6884_v13 }
 0xb0f   : > { %6048 = vmatpush3.bf16.msra.mxu0 %v6047_v63  ;;  %5797 = vmatprep.mubr.msk.f32.mxu0 %vm6243_vm1, %v6244_v20 }
 0xb10   : > { %6049 = vmatprep.subr.bf16.mxu0 %v6242_v12 }
 0xb13   : > { %6051 = vmatpush3.bf16.msra.mxu0 %v6050_v3 }
 0xb14   : > { %5810 = vmatprep.subr.mxu0 %v6244_v20 }
 0xb16   : > { %5798 = vmatmul.mubr.msk.f32.vlgmr.msra.gmra.mrb[40].mxu0 %vm537_vm0, %v6884_v13 }
 0xb17   : > { %5812 = vmatprep.mubr.msk.f32.mxu0 %vm6243_vm1, %v6244_v20 }
 0xbb9   : > { %v2967_v4 = vpop.f32.mrb[28].mxu0  ;;  %v3107_v5 = vpop.f32.mrb[24].mxu1 }
 0xbba   : > { %v5678_v8 = vpop.f32.mrb[29].mxu0  ;;  %v5700_v9 = vpop.f32.mrb[25].mxu1  ;;  %v2968_v18 = vadd.f32 %v5175_v15, %v2967_v4  ;;  %v3108_v25 = vadd.f32 %v5177_v6, %v3107_v5 }
 0xbc1   : > { %v3037_v11 = vpop.f32.mrb[30].mxu0  ;;  %v3247_v14 = vpop.f32.mrb[26].mxu1 }
 0xbc2   : > { %v3248_v16 = vadd.f32 %v5179_v10, %v3247_v14  ;;  %v5689_v17 = vpop.f32.mrb[31].mxu0  ;;  %v5722_v13 = vpop.f32.mrb[27].mxu1  ;;  %v3038_v35 = vadd.f32 %v5176_v30, %v3037_v11 }
 0xbc4   : > { %5801 = vmatpush3.xpose.msk.msra.mxu1 %vm1541_vm2, %v3248_v16 }
 0xbc5   : > { %5805 = vmatprep.subr.mxu1 %v6244_v20 }
 0xbc7   : > { %5803 = vmatmul.mubr.msk.f32.vlgmr.msra.gmra.mrb[34].mxu1 %vm1541_vm2, %v2968_v18 }
 0xbc8   : > { %5807 = vmatprep.mubr.msk.f32.mxu1 %vm6243_vm1, %v6244_v20 }
 0xbc9   : > { %v3177_v21 = vpop.f32.mrb[32].mxu0  ;;  %v3387_v22 = vpop.f32.mrb[28].mxu1 }
 0xbca   : > { %v3388_v23 = vadd.f32 %v5181_v19, %v3387_v22  ;;  %v5711_v24 = vpop.f32.mrb[33].mxu0  ;;  %v5744_v7 = vpop.f32.mrb[29].mxu1  ;;  %v3178_v44 = vadd.f32 %v5178_v40, %v3177_v21 }
 0xbcc   : > { %5811 = vmatpush3.xpose.msk.msra.mxu0 %vm1541_vm2, %v3388_v23 }
 0xbcd   : > { %5820 = vmatprep.subr.mxu0 %v6244_v20 }
 0xbcf   : > { %5813 = vmatmul.mubr.msk.f32.vlgmr.msra.gmra.mrb[42].mxu0 %vm1541_vm2, %v3108_v25 }
 0xbd0   : > { %5822 = vmatprep.mubr.msk.f32.mxu0 %vm6243_vm1, %v6244_v20 }
 0xbd1   : > { %v3317_v28 = vpop.f32.mrb[34].mxu0  ;;  %v3527_v29 = vpop.f32.mrb[30].mxu1 }
 0xbd2   : > { %v3318_v31 = vadd.f32 %v5180_v26, %v3317_v28  ;;  %v3528_v32 = vadd.f32 %v5183_v27, %v3527_v29  ;;  %v5733_v33 = vpop.f32.mrb[35].mxu0  ;;  %v5766_v34 = vpop.f32.mrb[31].mxu1 }
 0xbd4   : > { %5806 = vmatpush3.xpose.msk.msra.mxu1 %vm1541_vm2, %v3318_v31  ;;  %5821 = vmatpush3.msra.mxu0 %v3528_v32 }
 0xbd5   : > { %5815 = vmatprep.subr.mxu1 %v6244_v20  ;;  %5830 = vmatprep.subr.mxu0 %v6244_v20 }
 0xbd7   : > { %5808 = vmatmul.mubr.msk.f32.vlgmr.msra.gmra.mrb[36].mxu1 %vm1541_vm2, %v3038_v35 }
 0xbd8   : > { %5817 = vmatprep.mubr.msk.f32.mxu1 %vm6243_vm1, %v6244_v20 }
 0xbd9   : > { %v3457_v38 = vpop.f32.mrb[36].mxu0  ;;  %v7099_v39 = vpop.f32.mrb[32].mxu1 }
 0xbda   : > { %v3458_v41 = vadd.f32 %v5182_v37, %v3457_v38  ;;  %v5755_v42 = vpop.f32.mrb[37].mxu0  ;;  %v5788_v43 = vpop.f32.mrb[33].mxu1 }
 0xbdc   : > { %5816 = vmatpush3.xpose.msk.msra.mxu1 %vm1541_vm2, %v3458_v41 }
 0xbdd   : > { %5825 = vmatprep.subr.mxu1 %v6244_v20 }
 0xbdf   : > { %5818 = vmatmul.mubr.msk.f32.vlgmr.msra.gmra.mrb[38].mxu1 %vm1541_vm2, %v3178_v44 }
 0xbe0   : > { %5827 = vmatprep.mubr.msk.f32.mxu1 %vm6243_vm1, %v6244_v20 }
 0xbe1   : > { %v3597_v46 = vpop.f32.mrb[38].mxu0 }
 0xbe2   : > { %v3598_v47 = vadd.f32 %v5184_v45, %v3597_v46  ;;  %v5777_v48 = vpop.f32.mrb[39].mxu0 }
 0xbe3   : > { %v5185_v48 = vld [vmem:[%s7309_s3 + $0x16] ss:$0 sm:$0xff] }
 0xbe4   : > { %5826 = vmatpush3.msra.mxu1 %v3598_v47 }
 0xbe5   : > { %5835 = vmatprep.subr.mxu1 %v6244_v20 }
 0xbe9   : > { %v7113_v50 = vpop.f32.mrb[40].mxu0 }
 0xbea   : > { %v5799_v51 = vpop.f32.mrb[41].mxu0 }
 0xc9a   : > { %v3813_v52 = vpop.f32.mrb[34].mxu1 }
 0xc9b   : > { %v5804_v53 = vpop.f32.mrb[35].mxu1  ;;  %v4045_v54 = vsel %vm1541_vm2, %v3813_v52, -inf }
 0xc9c   : > { %4046 = vmax.xlane.f32.xlu0 %v4045_v54  ;;  %v3668_v53 = vadd.f32 %v5185_v48, %v7099_v39  ;;  %v5186_v39 = vld [vmem:[%s7309_s3 + $0x17] ss:$0 sm:$0xff] }
 0xca2   : > { %v3965_v55 = vpop.f32.mrb[42].mxu0 }
 0xca3   : > { %v5814_v56 = vpop.f32.mrb[43].mxu0  ;;  %v4051_v57 = vsel %vm1541_vm2, %v3965_v55, -inf }
 0xca4   : > { %4052 = vmax.xlane.f32.xlu0 %v4051_v57 }
 0xcaa   : > { %v3889_v58 = vpop.f32.mrb[36].mxu1 }
 0xcab   : > { %v5809_v59 = vpop.f32.mrb[37].mxu1  ;;  %v4048_v60 = vsel %vm1541_vm2, %v3889_v58, -inf }
 0xcac   : > { %4049 = vmax.xlane.f32.xlu1 %v4048_v60 }
 0xcb2   : > { %v4041_v61 = vpop.f32.mrb[38].mxu1 }
 0xcb3   : > { %v5819_v0 = vpop.f32.mrb[39].mxu1  ;;  %v4054_v62 = vsel %vm1541_vm2, %v4041_v61, -inf }
 0xcb4   : > { %4055 = vmax.xlane.f32.xlu1 %v4054_v62 }
 0xd29   : > { %v4047_v63 = vpop.xlane.xlu0 %4046 }
 0xd2a   : > { %v4057_v1 = vsub.f32 %v3813_v52, %v4047_v63  ;;  %v5211_v63 = vld [vmem:[%s7310_s4 + $0x20] sm:$0xff] }
 0xd2c   : > { %v4061_v2 = vmul.f32 1.442695, %v4057_v1  ;;  %v5213_v1 = vld [vmem:[%s7310_s4 + $0x30] sm:$0xff] }
 0xd2e   : > { %6146 = vpow2.f32 %v4061_v2 }
 0xd31   : > { %v4053_v3 = vpop.xlane.xlu0 %4052 }
 0xd32   : > { %v4059_v4 = vsub.f32 %v3965_v55, %v4053_v3 }
 0xd34   : > { %v4065_v5 = vmul.f32 1.442695, %v4059_v4 }
 0xd36   : > { %6148 = vpow2.f32 %v4065_v5 }
 0xd38   : > { %v6147_v8 = vpop.eup %6146 }
 0xd39   : > { %v4050_v9 = vpop.xlane.xlu1 %4049  ;;  %v4069_v10 = vsel %vm1541_vm2, %v6147_v8, 0.0 }
 0xd3a   : > { %v4058_v11 = vsub.f32 %v3889_v58, %v4050_v9  ;;  %4070 = vadd.xlane.f32.xlu0 %v4069_v10 }
 0xd3c   : > { %v4063_v14 = vmul.f32 1.442695, %v4058_v11 }
 0xd3e   : > { %6150 = vpow2.f32 %v4063_v14 }
 0xd40   : > { %v6149_v15 = vpop.eup %6148 }
 0xd41   : > { %v4056_v16 = vpop.xlane.xlu1 %4055  ;;  %v4075_v17 = vsel %vm1541_vm2, %v6149_v15, 0.0 }
 0xd42   : > { %v4060_v13 = vsub.f32 %v4041_v61, %v4056_v16  ;;  %4076 = vadd.xlane.f32.xlu0 %v4075_v17  ;;  %v3738_v61 = vadd.f32 %v5186_v39, %v7113_v50  ;;  %v5212_v50 = vld [vmem:[%s7310_s4 + $0x28] sm:$0xff]  ;;  %v5237_v39 = vld [vmem:[%s7318_s12 + $0x60] sm:$0xff] }
 0xd44   : > { %v4067_v18 = vmul.f32 1.442695, %v4060_v13 }
 0xd46   : > { %6152 = vpow2.f32 %v4067_v18 }
 0xd48   : > { %v6151_v19 = vpop.eup %6150 }
 0xd49   : > { %v4072_v21 = vsel %vm1541_vm2, %v6151_v19, 0.0 }
 0xd4a   : > { %4073 = vadd.xlane.f32.xlu1 %v4072_v21 }
 0xd50   : > { %v6153_v22 = vpop.eup %6152 }
 0xd51   : > { %v4078_v6 = vsel %vm1541_vm2, %v6153_v22, 0.0 }
 0xd52   : > { %4079 = vadd.xlane.f32.xlu1 %v4078_v6 }
 0xdc7   : > { %v4071_v23 = vpop.xlane.xlu0 %4070 }
 0xdc8   : > { %6154 = vrcp.f32 %v4071_v23 }
 0xdcf   : > { %v4077_v24 = vpop.xlane.xlu0 %4076 }
 0xdd0   : > { %6156 = vrcp.f32 %v4077_v24 }
 0xdd2   : > { %v6155_v7 = vpop.eup %6154 }
 0xdd3   : > { %v4082_v25 = vmul.f32 %v6155_v7, %v6147_v8  ;;  %v5214_v8 = vld [vmem:[%s7310_s4 + $0x38] sm:$0xff] }
 0xdd5   : > { %v4090_v26 = vmul.f32 %v4082_v25, %v6694_v49 }
 0xdd7   : > { %v4074_v27 = vpop.xlane.xlu1 %4073  ;;  %v4094_v28 = vsel %vm1541_vm2, %v4090_v26, 0.0 }
 0xdd8   : > { %6158 = vrcp.f32 %v4074_v27  ;;  %4095 = vadd.xlane.f32.xlu0 %v4094_v28 }
 0xdda   : > { %v6157_v29 = vpop.eup %6156 }
 0xddb   : > { %v4086_v30 = vmul.f32 %v6157_v29, %v6149_v15 }
 0xddd   : > { %v4092_v31 = vmul.f32 %v4086_v30, %v6694_v49 }
 0xddf   : > { %v4080_v32 = vpop.xlane.xlu1 %4079  ;;  %v4100_v33 = vsel %vm1541_vm2, %v4092_v31, 0.0 }
 0xde0   : > { %6160 = vrcp.f32 %v4080_v32  ;;  %4101 = vadd.xlane.f32.xlu0 %v4100_v33 }
 0xde2   : > { %v6159_v34 = vpop.eup %6158 }
 0xde3   : > { %v4084_v35 = vmul.f32 %v6159_v34, %v6151_v19 }
 0xde5   : > { %v4091_v37 = vmul.f32 %v4084_v35, %v6694_v49 }
 0xde7   : > { %v4097_v38 = vsel %vm1541_vm2, %v4091_v37, 0.0 }
 0xde8   : > { %4098 = vadd.xlane.f32.xlu1 %v4097_v38 }
 0xdea   : > { %v6161_v40 = vpop.eup %6160 }
 0xdeb   : > { %v4088_v41 = vmul.f32 %v6161_v40, %v6153_v22  ;;  %v5227_v40 = vld [vmem:[%s7316_s10 + $0x30] sm:$0xff] }
 0xded   : > { %v4093_v42 = vmul.f32 %v4088_v41, %v6694_v49  ;;  %v5228_v41 = vld [vmem:[%s7316_s10 + $0x38] sm:$0xff] }
 0xdef   : > { %v4103_v43 = vsel %vm1541_vm2, %v4093_v42, 0.0 }
 0xdf0   : > { %4104 = vadd.xlane.f32.xlu1 %v4103_v43 }
 0xe65   : > { %v4096_v44 = vpop.xlane.xlu0 %4095 }
 0xe66   : > { %v4106_v45 = vadd.f32 1e-15, %v4096_v44 }
 0xe68   : > { %6162 = vrcp.f32 %v4106_v45 }
 0xe6d   : > { %v4102_v46 = vpop.xlane.xlu0 %4101 }
 0xe6e   : > { %v4108_v47 = vadd.f32 1e-15, %v4102_v46 }
 0xe70   : > { %6164 = vrcp.f32 %v4108_v47  ;;  %v5223_v47 = vld [vmem:[%s7314_s8 + $0x1] ss:$0 sm:$0xff] }
 0xe72   : > { %v6163_v51 = vpop.eup %6162 }
 0xe73   : > { %v4111_v52 = vmul.f32 %v6163_v51, %v4090_v26  ;;  %v5224_v51 = vld [vmem:[%s7315_s9 + $0x1] ss:$0 sm:$0xff] }
 0xe75   : > { %v4099_v54 = vpop.xlane.xlu1 %4098  ;;  %5823 = vmatmul.mubr.msk.f32.vlgmr.msra.gmra.mrb[44].mxu0 %vm1541_vm2, %v4111_v52 }
 0xe76   : > { %v4107_v49 = vadd.f32 1e-15, %v4099_v54  ;;  %5831 = vmatpush3.msra.mxu0 %v3668_v53  ;;  %5832 = vmatprep.mubr.msk.f32.mxu0 %vm6243_vm1, %v6244_v20  ;;  %v5233_v54 = vld [vmem:[%s7318_s12 + $0x40] sm:$0xff] }
 0xe77   : > { %5840 = vmatprep.subr.mxu0 %v6244_v20 }
 0xe78   : > { %6166 = vrcp.f32 %v4107_v49  ;;  %v5234_v49 = vld [vmem:[%s7318_s12 + $0x48] sm:$0xff] }
 0xe7a   : > { %v6165_v55 = vpop.eup %6164 }
 0xe7b   : > { %v4115_v56 = vmul.f32 %v6165_v55, %v4092_v31  ;;  %v6059_v55 = vpack.c.bf16 %v5234_v49, %v5233_v54 }
 0xe7d   : > { %v4105_v57 = vpop.xlane.xlu1 %4104  ;;  %5833 = vmatmul.mubr.msk.f32.vlgmr.msra.gmra.mrb[46].mxu0 %vm1541_vm2, %v4115_v56  ;;  %v5235_v56 = vld [vmem:[%s7318_s12 + $0x50] sm:$0xff] }
 0xe7e   : > { %v4109_v58 = vadd.f32 1e-15, %v4105_v57  ;;  %5842 = vmatprep.mubr.msk.f32.mxu0 %vm6243_vm1, %v6244_v20  ;;  %5841 = vmatpush3.msra.mxu0 %v5211_v63  ;;  %v5236_v57 = vld [vmem:[%s7318_s12 + $0x58] sm:$0xff]  ;;  %v5230_v63 = vld [vmem:[%s7317_s11 + $0x1] ss:$0 sm:$0xff] }
 0xe7f   : > { %5850 = vmatprep.subr.mxu0 %v6244_v20 }
 0xe80   : > { %6168 = vrcp.f32 %v4109_v58  ;;  %v6062_v58 = vpack.c.bf16 %v5236_v57, %v5235_v56 }
 0xe82   : > { %v6167_v59 = vpop.eup %6166 }
 0xe83   : > { %v4113_v60 = vmul.f32 %v6167_v59, %v4091_v37  ;;  %v5225_v37 = vld [vmem:[%s7316_s10 + $0x20] sm:$0xff]  ;;  %v5238_v59 = vld [vmem:[%s7318_s12 + $0x68] sm:$0xff] }
 0xe85   : > { %5828 = vmatmul.mubr.msk.f32.vlgmr.msra.gmra.mrb[40].mxu1 %vm1541_vm2, %v4113_v60  ;;  %v6065_v60 = vpack.c.bf16 %v5238_v59, %v5237_v39 }
 0xe86   : > { %5836 = vmatpush3.msra.mxu1 %v3738_v61  ;;  %5837 = vmatprep.mubr.msk.f32.mxu1 %vm6243_vm1, %v6244_v20  ;;  %v5239_v61 = vld [vmem:[%s7318_s12 + $0x70] sm:$0xff] }
 0xe87   : > { %5845 = vmatprep.subr.mxu1 %v6244_v20 }
 0xe8a   : > { %v6169_v0 = vpop.eup %6168 }
 0xe8b   : > { %v4117_v62 = vmul.f32 %v6169_v0, %v4093_v42  ;;  %v6056_v42 = vpack.c.bf16 %v5228_v41, %v5227_v40  ;;  %v5240_v0 = vld [vmem:[%s7318_s12 + $0x78] sm:$0xff] }
 0xe8d   : > { %5838 = vmatmul.mubr.msk.f32.vlgmr.msra.gmra.mrb[42].mxu1 %vm1541_vm2, %v4117_v62  ;;  %v6068_v62 = vpack.c.bf16 %v5240_v0, %v5239_v61 }
 0xe8e   : > { %5847 = vmatprep.mubr.msk.f32.mxu1 %vm6243_vm1, %v6244_v20  ;;  %5846 = vmatpush3.msra.mxu1 %v5212_v50 }
 0xe8f   : > { %5855 = vmatprep.subr.mxu1 %v6244_v20 }
 0xf48   : > { %v4187_v2 = vpop.f32.mrb[44].mxu0 }
 0xf49   : > { %v5824_v3 = vpop.f32.mrb[45].mxu0  ;;  %5843 = vmatmul.mubr.msk.f32.vlgmr.msra.gmra.mrb[48].mxu0 %vm1541_vm2, %v4187_v2 }
 0xf4a   : > { %5851 = vmatpush3.msra.mxu0 %v5213_v1  ;;  %5852 = vmatprep.mubr.msk.f32.mxu0 %vm6243_vm1, %v6244_v20 }
 0xf4b   : > { %6052 = vmatprep.subr.bf16.mxu0 %v6242_v12 }
 0xf50   : > { %v4333_v4 = vpop.f32.mrb[46].mxu0 }
 0xf51   : > { %v5834_v5 = vpop.f32.mrb[47].mxu0  ;;  %5853 = vmatmul.mubr.msk.f32.vlgmr.msra.gmra.mrb[50].mxu0 %vm1541_vm2, %v4333_v4 }
 0xf52   : > { %5868 = vmatprep.mubr.msk.f32.mxu0 %vm6243_vm1, %v6244_v20 }
 0xf58   : > { %v4260_v9 = vpop.f32.mrb[40].mxu1 }
 0xf59   : > { %v5829_v10 = vpop.f32.mrb[41].mxu1  ;;  %5848 = vmatmul.mubr.msk.f32.vlgmr.msra.gmra.mrb[44].mxu1 %vm1541_vm2, %v4260_v9  ;;  %v5242_v9 = vld [vmem:[%s7319_s13 + $0x1] ss:$0 sm:$0xff] }
 0xf5a   : > { %5856 = vmatpush3.msra.mxu1 %v5214_v8  ;;  %5857 = vmatprep.mubr.msk.f32.mxu1 %vm6243_vm1, %v6244_v20 }
 0xf5b   : > { %6058 = vmatprep.subr.bf16.mxu1 %v6242_v12 }
 0xf60   : > { %v4406_v11 = vpop.f32.mrb[42].mxu1 }
 0xf61   : > { %v5839_v14 = vpop.f32.mrb[43].mxu1  ;;  %5858 = vmatmul.mubr.msk.f32.vlgmr.msra.gmra.mrb[46].mxu1 %vm1541_vm2, %v4406_v11 }
 0xf62   : > { %5887 = vmatprep.mubr.msk.f32.mxu1 %vm6243_vm1, %v6244_v20  ;;  %v5220_v20 = vld [vmem:[%s7311_s5 + $0x1] ss:$0 sm:$0xff]  ;;  %6060 = vmatpush3.bf16.msra.mxu1 %v6059_v55 }
 0xf63   : > { %6061 = vmatprep.subr.bf16.mxu1 %v6242_v12 }
 0xf66   : > { %6063 = vmatpush3.bf16.msra.mxu1 %v6062_v58 }
 0xf67   : > { %6064 = vmatprep.subr.bf16.mxu1 %v6242_v12 }
 0xf6a   : > { %6066 = vmatpush3.bf16.msra.mxu1 %v6065_v60 }
 0xf6b   : > { %6067 = vmatprep.subr.bf16.mxu1 %v6242_v12 }
 0xf6e   : > { %6069 = vmatpush3.bf16.msra.mxu1 %v6068_v62 }
0x101c   : > { %v4484_v15 = vpop.f32.mrb[48].mxu0 }
0x101d   : > { %v5844_v16 = vpop.f32.mrb[49].mxu0  ;;  %v4707_v19 = vsel %vm537_vm0, %v4484_v15, 0.0 }
0x1024   : > { %v4630_v17 = vpop.f32.mrb[50].mxu0 }
0x1025   : > { %v5854_v13 = vpop.f32.mrb[51].mxu0  ;;  %v4710_v23 = vsel %vm537_vm0, %v4630_v17, 0.0 }
0x102c   : > { %v4557_v18 = vpop.f32.mrb[44].mxu1 }
0x102d   : > { %v4708_v21 = vsel %vm537_vm0, %v4557_v18, 0.0  ;;  %v5849_v22 = vpop.f32.mrb[45].mxu1 }
0x102e   : > { %v4709_v6 = vadd.f32 %v4708_v21, %v4707_v19 }
0x1030   : > { %v4711_v24 = vadd.f32 %v4710_v23, %v4709_v6 }
0x1034   : > { %v4703_v7 = vpop.f32.mrb[46].mxu1 }
0x1035   : > { %v4712_v25 = vsel %vm537_vm0, %v4703_v7, 0.0  ;;  %v5859_v26 = vpop.f32.mrb[47].mxu1  ;;  %v5244_v7 = vld [vmem:[%s7320_s14] ss:$0 sm:$0xff] }
0x1036   : > { %v4713_v27 = vadd.f32 %v4712_v25, %v4711_v24 }
0x1038   : > { %v4722_v28 = vadd.f32 %v5220_v20, %v4713_v27  ;;  %v5245_v20 = vld [vmem:[%s7321_s15] ss:$0 sm:$0xff] }
0x103a   : > { %v7189_v29 = vadd.f32 %v4722_v28, %v6829_v36  ;;  %v5226_v36 = vld [vmem:[%s7316_s10 + $0x28] sm:$0xff] }
0x103b   : > { %v6053_v38 = vpack.c.bf16 %v5226_v36, %v5225_v37 }
0x103c   : > { %v4728_v30 = vsel %vm537_vm0, %v7189_v29, 0.0 }
0x103d   : > { %4729 = vadd.xlane.f32.xlu0 %v4728_v30  ;;  %6054 = vmatpush3.bf16.msra.mxu0 %v6053_v38 }
0x103e   : > { %6055 = vmatprep.subr.bf16.mxu0 %v6242_v12 }
0x1041   : > { %6057 = vmatpush3.bf16.msra.mxu0 %v6056_v42 }
0x10ca   : > { %v4730_v31 = vpop.xlane.xlu0 %4729 }
0x10cb   : > { %v4731_v32 = vmul.f32 0.03125, %v4730_v31 }
0x10cd   : > { %v4732_v33 = vsub.f32 %v7189_v29, %v4731_v32 }
0x10cf   : > { %v4733_v34 = vmul.f32 %v4732_v33, %v4732_v33 }
0x10d1   : > { %v4734_v35 = vsel %vm537_vm0, %v4733_v34, 0.0 }
0x10d2   : > { %4735 = vadd.xlane.f32.xlu1 %v4734_v35 }
0x115f   : > { %v4736_v43 = vpop.xlane.xlu1 %4735 }
0x1160   : > { %v4737_v44 = vmul.f32 0.03125, %v4736_v43 }
0x1162   : > { %v4738_v45 = vadd.f32 1e-05, %v4737_v44 }
0x1164   : > { %6170 = vrsqrt.f32 %v4738_v45 }
0x116e   : > { %v6171_v46 = vpop.eup %6170 }
0x116f   : > { %v4740_v48 = vmul.f32 %v6171_v46, %v4732_v33 }
0x1171   : > { %v4747_v52 = vmul.f32 %v5223_v47, %v4740_v48 }
0x1173   : > { %v4754_v53 = vadd.f32 %v5224_v51, %v4747_v52 }
0x1175   : > { %5869 = vmatmul.mubr.msk.f32.vlgmr.msra.gmra.mrb[52].mxu0 %vm537_vm0, %v4754_v53 }
0x1248   : > { %v4837_v50 = vpop.f32.mrb[52].mxu0 }
0x1249   : > { %v4838_v1 = vadd.f32 %v5230_v63, %v4837_v50  ;;  %v5870_v2 = vpop.f32.mrb[53].mxu0 }
0x124b   : > { %v5232_v3 = vmul.f32 -1.442695, %v4838_v1 }
0x124d   : > { %6172 = vpow2.f32 %v5232_v3 }
0x1257   : > { %v6173_v12 = vpop.eup %6172 }
0x1258   : > { %v4844_v4 = vadd.f32 1.0, %v6173_v12 }
0x125a   : > { %6174 = vrcp.f32 %v4844_v4 }
0x1264   : > { %v6175_v5 = vpop.eup %6174 }
0x1265   : > { %v4847_v8 = vmul.f32 %v6175_v5, %v4838_v1 }
0x1267   : > { %5888 = vmatmul.mubr.msk.f32.vlgmr.msra.gmra.mrb[48].mxu1 %vm2658_vm3, %v4847_v8 }
0x133a   : > { %v4934_v10 = vpop.f32.mrb[48].mxu1 }
0x133b   : > { %v4935_v11 = vadd.f32 %v5242_v9, %v4934_v10  ;;  %v5889_v14 = vpop.f32.mrb[49].mxu1 }
0x133d   : > { %v4938_v15 = vadd.f32 %v4935_v11, %v7189_v29 }
0x133f   : > { %v4941_v16 = vsel %vm537_vm0, %v4938_v15, 0.0 }
0x1340   : > { %4942 = vadd.xlane.f32.xlu0 %v4941_v16 }
0x13cd   : > { %v4943_v17 = vpop.xlane.xlu0 %4942 }
0x13ce   : > { %v4944_v13 = vmul.f32 0.03125, %v4943_v17 }
0x13d0   : > { %v4945_v18 = vsub.f32 %v4938_v15, %v4944_v13 }
0x13d2   : > { %v4946_v19 = vmul.f32 %v4945_v18, %v4945_v18 }
0x13d4   : > { %v4947_v21 = vsel %vm537_vm0, %v4946_v19, 0.0 }
0x13d5   : > { %4948 = vadd.xlane.f32.xlu1 %v4947_v21 }
0x1462   : > { %v4949_v22 = vpop.xlane.xlu1 %4948 }
0x1463   : > { %v4950_v6 = vmul.f32 0.03125, %v4949_v22 }
0x1465   : > { %v4951_v23 = vadd.f32 1e-05, %v4950_v6 }
0x1467   : > { %6176 = vrsqrt.f32 %v4951_v23 }
0x1471   : > { %v6177_v24 = vpop.eup %6176 }
0x1472   : > { %v4953_v25 = vmul.f32 %v6177_v24, %v4945_v18 }
0x1474   : > { %v4960_v26 = vmul.f32 %v5244_v7, %v4953_v25 }
0x1476   : > { %v4967_v27 = vadd.f32 %v5245_v20, %v4960_v26 }
0x1478   : > { %4968 = vst.msk [vmem:[%s525_s23] sm:$0xff] %vm537_vm0, %v4967_v27 }
0x1479   : > { %6191 = shalt.err (!%p6188_p3)
}
0x147a   : > { %s6192_s19 = scalar_lea.hbm %s7263_s27, 128  ;;  %s6196_s23 = scalar_lea.hbm %s7322_s16, 256 }
0x147b   : > { %p6193_p4 = scmp.ne.s32.totalorder %s7263_s27, %s6192_s19  ;;  %p6197_p9 = scmp.lt.u32.totalorder %s7263_s27, %s7322_s16 }
0x147c   : > { %p6198_p10 = scmp.lt.u32.totalorder %s6196_s23, %s6192_s19  ;;  %p6200_p12 = scmp.lt.u32.totalorder %s6192_s19, %s7263_s27 }
0x147d   : > { %p6194_p7 = pnand %p6193_p4, %p6369_p5 }
0x147e   : > { %p6199_p11 = por %p6198_p10, %p6197_p9 }
0x147f   : > { %p6195_p8 = pneg %p6194_p7 }
0x1480   : > { %p6201_p13 = por %p6200_p12, %p6199_p11 }
0x1482   : > { %p6202_p0 = pnand %p6201_p13, %p6195_p8 }
0x1484   : > { %6205 = shalt.err (!%p6202_p0)
}
0x1485   : > { %6070 = dma.vmem_to_hbm [thread:$0]  (%p6369_p5), %s7265_s30, 128, %s7263_s27, %s4970_s17  }
0x1486 PF: > { %s7341_s24 = sld [smem:[#allocation7_spill]]  ;;  %s7342_s25 = sld [smem:[#allocation5_spill]] }
0x148c   : > { %p6076_p1 = scmp.ge.s32.totalorder %s7341_s24, 2  ;;  %s4995_s18 = sand.u32 1, %s7342_s25  }
0x148d   : > { %s4996_s28 = scalar_lea.sflag [#allocation3], %s4995_s18 }
0x148e   : > { %p6073_p2 = pnand %p6076_p1, %p6373_p6 }
0x1490   : > { %6223 = dma.done.wait (!%p6073_p2), %s4996_s28, 128  }
0x1491   : > { %6225 = vsyncadd (!%p6073_p2), %s4996_s28, 4294967168  ;;  %s7344_s24 = sld [smem:[#allocation8_spill]]  ;;  %s7345_s19 = sld [smem:[#allocation6_spill]] }
0x1492   : > { %s7346_s23 = sld [smem:[#allocation9_spill]]  ;;  %s7347_s21 = smov %s6232_s22 }
0x1497   : > { %p26_p3 = scmp.ge.s32.totalorder %s7344_s24, 4   ;;  %s7348_s22 = smov %s7345_s19 }
0x1499   :  { %28 = sbr.rel (!%p26_p3) target bundleno = 5 (0x5), region = 134 }
0x14a0   :  { %5001 = vsyncpa [#allocation3], 1 }
0x14a1   :  { %5003 = vsyncpa [#allocation3 + $0x1], 1 }

</bundles_post_ra>
